<compile_context>
chip_gen: v5e
topology: v5e:2x2
jax: 0.10.0
libtpu: 0.0.40
codegen_flags: <defaults>
</compile_context>

<pallas_src>
import functools

import numpy as np

import jax
import jax.numpy as jnp
from jax import lax
from jax.experimental import pallas as pl
from jax.experimental.pallas import tpu as pltpu


# ----------------------------- Pallas kernel ---------------------------------
def _encoder_lstm_kernel(*refs, num_layers, T, B, H):
    """Fused multi-layer LSTM. Single grid step; everything stays in VMEM/vregs.

    refs layout:
      refs[0]                      : x2d   (T*B, I)   time-major input, flattened
      refs[1+3l], refs[2+3l],
      refs[3+3l]  (l = 0..L-1)     : wih_t (in, 4H), whh_t (H, 4H), bias (1, 4H)
                                     (i/f/o gate columns pre-scaled by 0.5)
      refs[1+3L]                   : out   (B, H)     final hidden of last layer
    """
    x_ref = refs[0]
    out_ref = refs[1 + 3 * num_layers]

    layer_in = x_ref[...]                                     # (T*B, I_l) f32
    for layer in range(num_layers):
        wih = refs[1 + 3 * layer][...]                        # (in, 4H), pre-scaled
        whh = refs[2 + 3 * layer][...]                        # (H, 4H),  pre-scaled
        b = refs[3 + 3 * layer][...]                          # (1, 4H),  pre-scaled

        # Input projection for ALL timesteps at once (M = T*B on the MXU),
        # hoisted off the serialized recurrent path.
        gx = jnp.dot(layer_in, wih, preferred_element_type=jnp.float32) + b  # (T*B, 4H)

        h = jnp.zeros((B, H), jnp.float32)
        c = jnp.zeros((B, H), jnp.float32)
        last_layer = layer == num_layers - 1
        hs = []

        for t in range(T):                                    # fully unrolled (T=8)
            gates = gx[t * B:(t + 1) * B, :] + jnp.dot(
                h, whh, preferred_element_type=jnp.float32
            )                                                 # (B, 4H) == one f32 vreg
            # ONE EUP pass: i/f/o lanes arrive pre-scaled by 0.5, so
            # sigmoid(x) = 0.5 * tanh(x/2) + 0.5 ; g lanes are plain tanh.
            th = jnp.tanh(gates)
            i_g = th[:, 0 * H:1 * H] * 0.5 + 0.5
            f_g = th[:, 1 * H:2 * H] * 0.5 + 0.5
            g_g = th[:, 2 * H:3 * H]
            o_g = th[:, 3 * H:4 * H] * 0.5 + 0.5

            c = f_g * c + i_g * g_g
            h = o_g * jnp.tanh(c)

            if not last_layer:
                hs.append(h)                                  # stays in vregs

        if last_layer:
            out_ref[...] = h.astype(out_ref.dtype)            # only out[:, -1, :]
        else:
            layer_in = jnp.concatenate(hs, axis=0)            # (T*B, H) time-major


# ------------------------------- wrappers -------------------------------------
def pack_params(params):
    """One-time weight transpose + bias folding + 0.5 gate pre-scale (outside per-call path)."""
    packed = []
    for (w_ih, w_hh, b_ih, b_hh) in params:
        four_h = w_ih.shape[0]
        H = four_h // 4
        # 0.5 pre-scale on the i/f/o gate rows enables the single-tanh sigmoid identity
        # in the kernel.  Multiplying by 0.5 is exact in f32 -> numerics unchanged.
        scale = np.full((four_h,), 0.5, np.float32)
        scale[2 * H:3 * H] = 1.0                               # g gate: plain tanh
        scale = jnp.asarray(scale)
        packed.append(
            (
                (jnp.asarray(w_ih, jnp.float32) * scale[:, None]).T,   # (in, 4H)
                (jnp.asarray(w_hh, jnp.float32) * scale[:, None]).T,   # (H, 4H)
                ((jnp.asarray(b_ih, jnp.float32)
                  + jnp.asarray(b_hh, jnp.float32)) * scale).reshape(1, -1),  # (1, 4H)
            )
        )
    return packed


@jax.jit
def encoder_rnn_forward(x_bti, packed_params):
    """EncoderRNN.forward: x (B, T, I) -> (B, 1, H)."""
    B, T, I = x_bti.shape
    num_layers = len(packed_params)
    H = packed_params[0][1].shape[0]                          # whh_t: (H, 4H)

    # Time-major, flattened so timestep t is a contiguous B-row slab.
    # TODO(synk): at production sizes do this reorder inside the kernel to save one
    #             HBM pass (see header note).
    x2d = jnp.transpose(x_bti, (1, 0, 2)).reshape(T * B, I).astype(jnp.float32)

    flat = []
    for (wih_t, whh_t, bias) in packed_params:
        flat += [wih_t, whh_t, bias]

    kernel = functools.partial(
        _encoder_lstm_kernel, num_layers=num_layers, T=T, B=B, H=H
    )

    last_h = pl.pallas_call(
        kernel,
        out_shape=jax.ShapeDtypeStruct((B, H), jnp.float32),
        grid_spec=pltpu.PrefetchScalarGridSpec(
            num_scalar_prefetch=0,
            grid=(1,),
            in_specs=[pl.BlockSpec(x2d.shape, lambda i: (0, 0))]
            + [pl.BlockSpec(a.shape, lambda i: (0, 0)) for a in flat],
            out_specs=pl.BlockSpec((B, H), lambda i: (0, 0)),
        ),
        compiler_params=pltpu.CompilerParams(
            dimension_semantics=("arbitrary",),
            vmem_limit_bytes=32 * 1024 * 1024,
        ),
    )(x2d, *flat)

    return last_h[:, None, :]                                 # (B, 1, H)


# ----------------------- parameter init (deterministic) ----------------------
def orthogonal_init(key, shape, gain):
    """Mimics nn.init.orthogonal_ (QR of a normal matrix, sign-corrected)."""
    rows, cols = shape
    big, small = max(rows, cols), min(rows, cols)
    a = jax.random.normal(key, (big, small), dtype=jnp.float32)
    q, r = jnp.linalg.qr(a)
    q = q * jnp.sign(jnp.diag(r))[None, :]
    if rows < cols:
        q = q.T
    return gain * q[:rows, :cols]


def make_lstm_params(key, input_size, hidden_size, num_layers):
    params = []
    k = 1.0 / jnp.sqrt(jnp.float32(hidden_size))
    for layer in range(num_layers):
        in_sz = input_size if layer == 0 else hidden_size
        key, k1, k2, k3, k4 = jax.random.split(key, 5)
        if layer == 0:
            # module applies orthogonal init (gain=sqrt(2)) to layer-0 weights
            w_ih = orthogonal_init(k1, (4 * hidden_size, in_sz), jnp.sqrt(2.0))
            w_hh = orthogonal_init(k2, (4 * hidden_size, hidden_size), jnp.sqrt(2.0))
        else:
            w_ih = jax.random.uniform(k1, (4 * hidden_size, in_sz), jnp.float32, -k, k)
            w_hh = jax.random.uniform(k2, (4 * hidden_size, hidden_size), jnp.float32, -k, k)
        b_ih = jax.random.uniform(k3, (4 * hidden_size,), jnp.float32, -k, k)
        b_hh = jax.random.uniform(k4, (4 * hidden_size,), jnp.float32, -k, k)
        params.append((w_ih, w_hh, b_ih, b_hh))
    return params


# ------------------------------ pure-JAX reference ---------------------------
def lstm_layer_ref(x_tbi, w_ih, w_hh, b_ih, b_hh):
    T, B, _ = x_tbi.shape
    H = w_hh.shape[1]

    def step(carry, x_t):
        h, c = carry
        gates = x_t @ w_ih.T + b_ih + h @ w_hh.T + b_hh
        i, f, g, o = jnp.split(gates, 4, axis=-1)
        i, f, o = jax.nn.sigmoid(i), jax.nn.sigmoid(f), jax.nn.sigmoid(o)
        g = jnp.tanh(g)
        c = f * c + i * g
        h = o * jnp.tanh(c)
        return (h, c), h

    init = (jnp.zeros((B, H), jnp.float32), jnp.zeros((B, H), jnp.float32))
    _, ys = lax.scan(step, init, x_tbi)
    return ys


def encoder_rnn_ref(x_bti, params):
    seq = jnp.transpose(x_bti, (1, 0, 2))
    for (w_ih, w_hh, b_ih, b_hh) in params:
        seq = lstm_layer_ref(seq, w_ih, w_hh, b_ih, b_hh)
    return seq[-1][:, None, :]


# ----------------------------------- main -------------------------------------
if __name__ == "__main__":
    INPUT_SIZE = 16
    HIDDEN_SIZE = 32
    NUM_LAYERS = 2
    BATCH = 8
    SEQ = 8

    key = jax.random.PRNGKey(0)
    key, kx, kp = jax.random.split(key, 3)
    x = jax.random.normal(kx, (BATCH, SEQ, INPUT_SIZE), dtype=jnp.float32)
    params = make_lstm_params(kp, INPUT_SIZE, HIDDEN_SIZE, NUM_LAYERS)
    packed = pack_params(params)  # one-time transpose + bias folding + 0.5 gate pre-scale

    out = jax.block_until_ready(encoder_rnn_forward(x, packed))
    ref = jax.block_until_ready(encoder_rnn_ref(x, params))

    assert out.shape == (BATCH, 1, HIDDEN_SIZE), out.shape
    assert jnp.allclose(out, ref, atol=1e-5, rtol=1e-5), float(
        jnp.max(jnp.abs(out - ref))
    )

    print("KERNEL_OK")
</pallas_src>

<mosaic_0001>
module attributes {stable_mosaic.version = 11 : i64} {
  func.func @_encoder_lstm_kernel(%arg0: i32, %arg1: memref<64x16xf32, #tpu.memory_space<vmem>>, %arg2: memref<16x128xf32, #tpu.memory_space<vmem>>, %arg3: memref<32x128xf32, #tpu.memory_space<vmem>>, %arg4: memref<1x128xf32, #tpu.memory_space<vmem>>, %arg5: memref<32x128xf32, #tpu.memory_space<vmem>>, %arg6: memref<32x128xf32, #tpu.memory_space<vmem>>, %arg7: memref<1x128xf32, #tpu.memory_space<vmem>>, %arg8: memref<8x32xf32, #tpu.memory_space<vmem>>) attributes {dimension_semantics = [#tpu.dimension_semantics<arbitrary>], iteration_bounds = array<i64: 1>, scalar_prefetch = 0 : i64, scratch_operands = 0 : i64, tpu.core_type = #tpu.core_type<tc>, window_params = [{pipeline_mode = #tpu.pipeline_mode<synchronous>, transform_indices = @transform_0, window_bounds = array<i64: 64, 16>}, {pipeline_mode = #tpu.pipeline_mode<synchronous>, transform_indices = @transform_1, window_bounds = array<i64: 16, 128>}, {pipeline_mode = #tpu.pipeline_mode<synchronous>, transform_indices = @transform_2, window_bounds = array<i64: 32, 128>}, {pipeline_mode = #tpu.pipeline_mode<synchronous>, transform_indices = @transform_3, window_bounds = array<i64: 1, 128>}, {pipeline_mode = #tpu.pipeline_mode<synchronous>, transform_indices = @transform_4, window_bounds = array<i64: 32, 128>}, {pipeline_mode = #tpu.pipeline_mode<synchronous>, transform_indices = @transform_5, window_bounds = array<i64: 32, 128>}, {pipeline_mode = #tpu.pipeline_mode<synchronous>, transform_indices = @transform_6, window_bounds = array<i64: 1, 128>}, {pipeline_mode = #tpu.pipeline_mode<synchronous>, transform_indices = @transform_7, window_bounds = array<i64: 8, 32>}]} {
    %c0 = arith.constant 0 : index
    %c0_0 = arith.constant 0 : index
    %0 = vector.load %arg1[%c0, %c0_0] : memref<64x16xf32, #tpu.memory_space<vmem>>, vector<64x16xf32>
    %c0_1 = arith.constant 0 : index
    %c0_2 = arith.constant 0 : index
    %1 = vector.load %arg2[%c0_1, %c0_2] : memref<16x128xf32, #tpu.memory_space<vmem>>, vector<16x128xf32>
    %c0_3 = arith.constant 0 : index
    %c0_4 = arith.constant 0 : index
    %2 = vector.load %arg3[%c0_3, %c0_4] : memref<32x128xf32, #tpu.memory_space<vmem>>, vector<32x128xf32>
    %c0_5 = arith.constant 0 : index
    %c0_6 = arith.constant 0 : index
    %3 = vector.load %arg4[%c0_5, %c0_6] : memref<1x128xf32, #tpu.memory_space<vmem>>, vector<1x128xf32>
    %cst = arith.constant dense<0.000000e+00> : vector<64x128xf32>
    %4 = tpu.matmul %0, %1, %cst {dimension_numbers = #tpu.dot_dimension_numbers<[1], [0], [0], [1], [0, 0, 1, 1], [], []>} : vector<64x16xf32>, vector<16x128xf32>, vector<64x128xf32> -> vector<64x128xf32>
    %5 = vector.broadcast %3 : vector<1x128xf32> to vector<64x128xf32>
    %6 = arith.addf %4, %5 : vector<64x128xf32>
    %cst_7 = arith.constant 0.000000e+00 : f32
    %7 = vector.broadcast %cst_7 : f32 to vector<8x32xf32>
    %cst_8 = arith.constant 0.000000e+00 : f32
    %8 = vector.broadcast %cst_8 : f32 to vector<8x32xf32>
    %9 = vector.extract_strided_slice %6 {offsets = [0, 0], sizes = [8, 128], strides = [1, 1]} : vector<64x128xf32> to vector<8x128xf32>
    %cst_9 = arith.constant dense<0.000000e+00> : vector<8x128xf32>
    %10 = tpu.matmul %7, %2, %cst_9 {dimension_numbers = #tpu.dot_dimension_numbers<[1], [0], [0], [1], [0, 0, 1, 1], [], []>} : vector<8x32xf32>, vector<32x128xf32>, vector<8x128xf32> -> vector<8x128xf32>
    %11 = arith.addf %9, %10 : vector<8x128xf32>
    %12 = math.tanh %11 : vector<8x128xf32>
    %13 = vector.extract_strided_slice %12 {offsets = [0, 0], sizes = [8, 32], strides = [1, 1]} : vector<8x128xf32> to vector<8x32xf32>
    %cst_10 = arith.constant 5.000000e-01 : f32
    %14 = vector.broadcast %cst_10 : f32 to vector<8x32xf32>
    %15 = arith.mulf %13, %14 : vector<8x32xf32>
    %cst_11 = arith.constant 5.000000e-01 : f32
    %16 = vector.broadcast %cst_11 : f32 to vector<8x32xf32>
    %17 = arith.addf %15, %16 : vector<8x32xf32>
    %18 = vector.extract_strided_slice %12 {offsets = [0, 32], sizes = [8, 32], strides = [1, 1]} : vector<8x128xf32> to vector<8x32xf32>
    %cst_12 = arith.constant 5.000000e-01 : f32
    %19 = vector.broadcast %cst_12 : f32 to vector<8x32xf32>
    %20 = arith.mulf %18, %19 : vector<8x32xf32>
    %cst_13 = arith.constant 5.000000e-01 : f32
    %21 = vector.broadcast %cst_13 : f32 to vector<8x32xf32>
    %22 = arith.addf %20, %21 : vector<8x32xf32>
    %23 = vector.extract_strided_slice %12 {offsets = [0, 64], sizes = [8, 32], strides = [1, 1]} : vector<8x128xf32> to vector<8x32xf32>
    %24 = vector.extract_strided_slice %12 {offsets = [0, 96], sizes = [8, 32], strides = [1, 1]} : vector<8x128xf32> to vector<8x32xf32>
    %cst_14 = arith.constant 5.000000e-01 : f32
    %25 = vector.broadcast %cst_14 : f32 to vector<8x32xf32>
    %26 = arith.mulf %24, %25 : vector<8x32xf32>
    %cst_15 = arith.constant 5.000000e-01 : f32
    %27 = vector.broadcast %cst_15 : f32 to vector<8x32xf32>
    %28 = arith.addf %26, %27 : vector<8x32xf32>
    %29 = arith.mulf %22, %8 : vector<8x32xf32>
    %30 = arith.mulf %17, %23 : vector<8x32xf32>
    %31 = arith.addf %29, %30 : vector<8x32xf32>
    %32 = math.tanh %31 : vector<8x32xf32>
    %33 = arith.mulf %28, %32 : vector<8x32xf32>
    %34 = vector.extract_strided_slice %6 {offsets = [8, 0], sizes = [8, 128], strides = [1, 1]} : vector<64x128xf32> to vector<8x128xf32>
    %cst_16 = arith.constant dense<0.000000e+00> : vector<8x128xf32>
    %35 = tpu.matmul %33, %2, %cst_16 {dimension_numbers = #tpu.dot_dimension_numbers<[1], [0], [0], [1], [0, 0, 1, 1], [], []>} : vector<8x32xf32>, vector<32x128xf32>, vector<8x128xf32> -> vector<8x128xf32>
    %36 = arith.addf %34, %35 : vector<8x128xf32>
    %37 = math.tanh %36 : vector<8x128xf32>
    %38 = vector.extract_strided_slice %37 {offsets = [0, 0], sizes = [8, 32], strides = [1, 1]} : vector<8x128xf32> to vector<8x32xf32>
    %cst_17 = arith.constant 5.000000e-01 : f32
    %39 = vector.broadcast %cst_17 : f32 to vector<8x32xf32>
    %40 = arith.mulf %38, %39 : vector<8x32xf32>
    %cst_18 = arith.constant 5.000000e-01 : f32
    %41 = vector.broadcast %cst_18 : f32 to vector<8x32xf32>
    %42 = arith.addf %40, %41 : vector<8x32xf32>
    %43 = vector.extract_strided_slice %37 {offsets = [0, 32], sizes = [8, 32], strides = [1, 1]} : vector<8x128xf32> to vector<8x32xf32>
    %cst_19 = arith.constant 5.000000e-01 : f32
    %44 = vector.broadcast %cst_19 : f32 to vector<8x32xf32>
    %45 = arith.mulf %43, %44 : vector<8x32xf32>
    %cst_20 = arith.constant 5.000000e-01 : f32
    %46 = vector.broadcast %cst_20 : f32 to vector<8x32xf32>
    %47 = arith.addf %45, %46 : vector<8x32xf32>
    %48 = vector.extract_strided_slice %37 {offsets = [0, 64], sizes = [8, 32], strides = [1, 1]} : vector<8x128xf32> to vector<8x32xf32>
    %49 = vector.extract_strided_slice %37 {offsets = [0, 96], sizes = [8, 32], strides = [1, 1]} : vector<8x128xf32> to vector<8x32xf32>
    %cst_21 = arith.constant 5.000000e-01 : f32
    %50 = vector.broadcast %cst_21 : f32 to vector<8x32xf32>
    %51 = arith.mulf %49, %50 : vector<8x32xf32>
    %cst_22 = arith.constant 5.000000e-01 : f32
    %52 = vector.broadcast %cst_22 : f32 to vector<8x32xf32>
    %53 = arith.addf %51, %52 : vector<8x32xf32>
    %54 = arith.mulf %47, %31 : vector<8x32xf32>
    %55 = arith.mulf %42, %48 : vector<8x32xf32>
    %56 = arith.addf %54, %55 : vector<8x32xf32>
    %57 = math.tanh %56 : vector<8x32xf32>
    %58 = arith.mulf %53, %57 : vector<8x32xf32>
    %59 = vector.extract_strided_slice %6 {offsets = [16, 0], sizes = [8, 128], strides = [1, 1]} : vector<64x128xf32> to vector<8x128xf32>
    %cst_23 = arith.constant dense<0.000000e+00> : vector<8x128xf32>
    %60 = tpu.matmul %58, %2, %cst_23 {dimension_numbers = #tpu.dot_dimension_numbers<[1], [0], [0], [1], [0, 0, 1, 1], [], []>} : vector<8x32xf32>, vector<32x128xf32>, vector<8x128xf32> -> vector<8x128xf32>
    %61 = arith.addf %59, %60 : vector<8x128xf32>
    %62 = math.tanh %61 : vector<8x128xf32>
    %63 = vector.extract_strided_slice %62 {offsets = [0, 0], sizes = [8, 32], strides = [1, 1]} : vector<8x128xf32> to vector<8x32xf32>
    %cst_24 = arith.constant 5.000000e-01 : f32
    %64 = vector.broadcast %cst_24 : f32 to vector<8x32xf32>
    %65 = arith.mulf %63, %64 : vector<8x32xf32>
    %cst_25 = arith.constant 5.000000e-01 : f32
    %66 = vector.broadcast %cst_25 : f32 to vector<8x32xf32>
    %67 = arith.addf %65, %66 : vector<8x32xf32>
    %68 = vector.extract_strided_slice %62 {offsets = [0, 32], sizes = [8, 32], strides = [1, 1]} : vector<8x128xf32> to vector<8x32xf32>
    %cst_26 = arith.constant 5.000000e-01 : f32
    %69 = vector.broadcast %cst_26 : f32 to vector<8x32xf32>
    %70 = arith.mulf %68, %69 : vector<8x32xf32>
    %cst_27 = arith.constant 5.000000e-01 : f32
    %71 = vector.broadcast %cst_27 : f32 to vector<8x32xf32>
    %72 = arith.addf %70, %71 : vector<8x32xf32>
    %73 = vector.extract_strided_slice %62 {offsets = [0, 64], sizes = [8, 32], strides = [1, 1]} : vector<8x128xf32> to vector<8x32xf32>
    %74 = vector.extract_strided_slice %62 {offsets = [0, 96], sizes = [8, 32], strides = [1, 1]} : vector<8x128xf32> to vector<8x32xf32>
    %cst_28 = arith.constant 5.000000e-01 : f32
    %75 = vector.broadcast %cst_28 : f32 to vector<8x32xf32>
    %76 = arith.mulf %74, %75 : vector<8x32xf32>
    %cst_29 = arith.constant 5.000000e-01 : f32
    %77 = vector.broadcast %cst_29 : f32 to vector<8x32xf32>
    %78 = arith.addf %76, %77 : vector<8x32xf32>
    %79 = arith.mulf %72, %56 : vector<8x32xf32>
    %80 = arith.mulf %67, %73 : vector<8x32xf32>
    %81 = arith.addf %79, %80 : vector<8x32xf32>
    %82 = math.tanh %81 : vector<8x32xf32>
    %83 = arith.mulf %78, %82 : vector<8x32xf32>
    %84 = vector.extract_strided_slice %6 {offsets = [24, 0], sizes = [8, 128], strides = [1, 1]} : vector<64x128xf32> to vector<8x128xf32>
    %cst_30 = arith.constant dense<0.000000e+00> : vector<8x128xf32>
    %85 = tpu.matmul %83, %2, %cst_30 {dimension_numbers = #tpu.dot_dimension_numbers<[1], [0], [0], [1], [0, 0, 1, 1], [], []>} : vector<8x32xf32>, vector<32x128xf32>, vector<8x128xf32> -> vector<8x128xf32>
    %86 = arith.addf %84, %85 : vector<8x128xf32>
    %87 = math.tanh %86 : vector<8x128xf32>
    %88 = vector.extract_strided_slice %87 {offsets = [0, 0], sizes = [8, 32], strides = [1, 1]} : vector<8x128xf32> to vector<8x32xf32>
    %cst_31 = arith.constant 5.000000e-01 : f32
    %89 = vector.broadcast %cst_31 : f32 to vector<8x32xf32>
    %90 = arith.mulf %88, %89 : vector<8x32xf32>
    %cst_32 = arith.constant 5.000000e-01 : f32
    %91 = vector.broadcast %cst_32 : f32 to vector<8x32xf32>
    %92 = arith.addf %90, %91 : vector<8x32xf32>
    %93 = vector.extract_strided_slice %87 {offsets = [0, 32], sizes = [8, 32], strides = [1, 1]} : vector<8x128xf32> to vector<8x32xf32>
    %cst_33 = arith.constant 5.000000e-01 : f32
    %94 = vector.broadcast %cst_33 : f32 to vector<8x32xf32>
    %95 = arith.mulf %93, %94 : vector<8x32xf32>
    %cst_34 = arith.constant 5.000000e-01 : f32
    %96 = vector.broadcast %cst_34 : f32 to vector<8x32xf32>
    %97 = arith.addf %95, %96 : vector<8x32xf32>
    %98 = vector.extract_strided_slice %87 {offsets = [0, 64], sizes = [8, 32], strides = [1, 1]} : vector<8x128xf32> to vector<8x32xf32>
    %99 = vector.extract_strided_slice %87 {offsets = [0, 96], sizes = [8, 32], strides = [1, 1]} : vector<8x128xf32> to vector<8x32xf32>
    %cst_35 = arith.constant 5.000000e-01 : f32
    %100 = vector.broadcast %cst_35 : f32 to vector<8x32xf32>
    %101 = arith.mulf %99, %100 : vector<8x32xf32>
    %cst_36 = arith.constant 5.000000e-01 : f32
    %102 = vector.broadcast %cst_36 : f32 to vector<8x32xf32>
    %103 = arith.addf %101, %102 : vector<8x32xf32>
    %104 = arith.mulf %97, %81 : vector<8x32xf32>
    %105 = arith.mulf %92, %98 : vector<8x32xf32>
    %106 = arith.addf %104, %105 : vector<8x32xf32>
    %107 = math.tanh %106 : vector<8x32xf32>
    %108 = arith.mulf %103, %107 : vector<8x32xf32>
    %109 = vector.extract_strided_slice %6 {offsets = [32, 0], sizes = [8, 128], strides = [1, 1]} : vector<64x128xf32> to vector<8x128xf32>
    %cst_37 = arith.constant dense<0.000000e+00> : vector<8x128xf32>
    %110 = tpu.matmul %108, %2, %cst_37 {dimension_numbers = #tpu.dot_dimension_numbers<[1], [0], [0], [1], [0, 0, 1, 1], [], []>} : vector<8x32xf32>, vector<32x128xf32>, vector<8x128xf32> -> vector<8x128xf32>
    %111 = arith.addf %109, %110 : vector<8x128xf32>
    %112 = math.tanh %111 : vector<8x128xf32>
    %113 = vector.extract_strided_slice %112 {offsets = [0, 0], sizes = [8, 32], strides = [1, 1]} : vector<8x128xf32> to vector<8x32xf32>
    %cst_38 = arith.constant 5.000000e-01 : f32
    %114 = vector.broadcast %cst_38 : f32 to vector<8x32xf32>
    %115 = arith.mulf %113, %114 : vector<8x32xf32>
    %cst_39 = arith.constant 5.000000e-01 : f32
    %116 = vector.broadcast %cst_39 : f32 to vector<8x32xf32>
    %117 = arith.addf %115, %116 : vector<8x32xf32>
    %118 = vector.extract_strided_slice %112 {offsets = [0, 32], sizes = [8, 32], strides = [1, 1]} : vector<8x128xf32> to vector<8x32xf32>
    %cst_40 = arith.constant 5.000000e-01 : f32
    %119 = vector.broadcast %cst_40 : f32 to vector<8x32xf32>
    %120 = arith.mulf %118, %119 : vector<8x32xf32>
    %cst_41 = arith.constant 5.000000e-01 : f32
    %121 = vector.broadcast %cst_41 : f32 to vector<8x32xf32>
    %122 = arith.addf %120, %121 : vector<8x32xf32>
    %123 = vector.extract_strided_slice %112 {offsets = [0, 64], sizes = [8, 32], strides = [1, 1]} : vector<8x128xf32> to vector<8x32xf32>
    %124 = vector.extract_strided_slice %112 {offsets = [0, 96], sizes = [8, 32], strides = [1, 1]} : vector<8x128xf32> to vector<8x32xf32>
    %cst_42 = arith.constant 5.000000e-01 : f32
    %125 = vector.broadcast %cst_42 : f32 to vector<8x32xf32>
    %126 = arith.mulf %124, %125 : vector<8x32xf32>
    %cst_43 = arith.constant 5.000000e-01 : f32
    %127 = vector.broadcast %cst_43 : f32 to vector<8x32xf32>
    %128 = arith.addf %126, %127 : vector<8x32xf32>
    %129 = arith.mulf %122, %106 : vector<8x32xf32>
    %130 = arith.mulf %117, %123 : vector<8x32xf32>
    %131 = arith.addf %129, %130 : vector<8x32xf32>
    %132 = math.tanh %131 : vector<8x32xf32>
    %133 = arith.mulf %128, %132 : vector<8x32xf32>
    %134 = vector.extract_strided_slice %6 {offsets = [40, 0], sizes = [8, 128], strides = [1, 1]} : vector<64x128xf32> to vector<8x128xf32>
    %cst_44 = arith.constant dense<0.000000e+00> : vector<8x128xf32>
    %135 = tpu.matmul %133, %2, %cst_44 {dimension_numbers = #tpu.dot_dimension_numbers<[1], [0], [0], [1], [0, 0, 1, 1], [], []>} : vector<8x32xf32>, vector<32x128xf32>, vector<8x128xf32> -> vector<8x128xf32>
    %136 = arith.addf %134, %135 : vector<8x128xf32>
    %137 = math.tanh %136 : vector<8x128xf32>
    %138 = vector.extract_strided_slice %137 {offsets = [0, 0], sizes = [8, 32], strides = [1, 1]} : vector<8x128xf32> to vector<8x32xf32>
    %cst_45 = arith.constant 5.000000e-01 : f32
    %139 = vector.broadcast %cst_45 : f32 to vector<8x32xf32>
    %140 = arith.mulf %138, %139 : vector<8x32xf32>
    %cst_46 = arith.constant 5.000000e-01 : f32
    %141 = vector.broadcast %cst_46 : f32 to vector<8x32xf32>
    %142 = arith.addf %140, %141 : vector<8x32xf32>
    %143 = vector.extract_strided_slice %137 {offsets = [0, 32], sizes = [8, 32], strides = [1, 1]} : vector<8x128xf32> to vector<8x32xf32>
    %cst_47 = arith.constant 5.000000e-01 : f32
    %144 = vector.broadcast %cst_47 : f32 to vector<8x32xf32>
    %145 = arith.mulf %143, %144 : vector<8x32xf32>
    %cst_48 = arith.constant 5.000000e-01 : f32
    %146 = vector.broadcast %cst_48 : f32 to vector<8x32xf32>
    %147 = arith.addf %145, %146 : vector<8x32xf32>
    %148 = vector.extract_strided_slice %137 {offsets = [0, 64], sizes = [8, 32], strides = [1, 1]} : vector<8x128xf32> to vector<8x32xf32>
    %149 = vector.extract_strided_slice %137 {offsets = [0, 96], sizes = [8, 32], strides = [1, 1]} : vector<8x128xf32> to vector<8x32xf32>
    %cst_49 = arith.constant 5.000000e-01 : f32
    %150 = vector.broadcast %cst_49 : f32 to vector<8x32xf32>
    %151 = arith.mulf %149, %150 : vector<8x32xf32>
    %cst_50 = arith.constant 5.000000e-01 : f32
    %152 = vector.broadcast %cst_50 : f32 to vector<8x32xf32>
    %153 = arith.addf %151, %152 : vector<8x32xf32>
    %154 = arith.mulf %147, %131 : vector<8x32xf32>
    %155 = arith.mulf %142, %148 : vector<8x32xf32>
    %156 = arith.addf %154, %155 : vector<8x32xf32>
    %157 = math.tanh %156 : vector<8x32xf32>
    %158 = arith.mulf %153, %157 : vector<8x32xf32>
    %159 = vector.extract_strided_slice %6 {offsets = [48, 0], sizes = [8, 128], strides = [1, 1]} : vector<64x128xf32> to vector<8x128xf32>
    %cst_51 = arith.constant dense<0.000000e+00> : vector<8x128xf32>
    %160 = tpu.matmul %158, %2, %cst_51 {dimension_numbers = #tpu.dot_dimension_numbers<[1], [0], [0], [1], [0, 0, 1, 1], [], []>} : vector<8x32xf32>, vector<32x128xf32>, vector<8x128xf32> -> vector<8x128xf32>
    %161 = arith.addf %159, %160 : vector<8x128xf32>
    %162 = math.tanh %161 : vector<8x128xf32>
    %163 = vector.extract_strided_slice %162 {offsets = [0, 0], sizes = [8, 32], strides = [1, 1]} : vector<8x128xf32> to vector<8x32xf32>
    %cst_52 = arith.constant 5.000000e-01 : f32
    %164 = vector.broadcast %cst_52 : f32 to vector<8x32xf32>
    %165 = arith.mulf %163, %164 : vector<8x32xf32>
    %cst_53 = arith.constant 5.000000e-01 : f32
    %166 = vector.broadcast %cst_53 : f32 to vector<8x32xf32>
    %167 = arith.addf %165, %166 : vector<8x32xf32>
    %168 = vector.extract_strided_slice %162 {offsets = [0, 32], sizes = [8, 32], strides = [1, 1]} : vector<8x128xf32> to vector<8x32xf32>
    %cst_54 = arith.constant 5.000000e-01 : f32
    %169 = vector.broadcast %cst_54 : f32 to vector<8x32xf32>
    %170 = arith.mulf %168, %169 : vector<8x32xf32>
    %cst_55 = arith.constant 5.000000e-01 : f32
    %171 = vector.broadcast %cst_55 : f32 to vector<8x32xf32>
    %172 = arith.addf %170, %171 : vector<8x32xf32>
    %173 = vector.extract_strided_slice %162 {offsets = [0, 64], sizes = [8, 32], strides = [1, 1]} : vector<8x128xf32> to vector<8x32xf32>
    %174 = vector.extract_strided_slice %162 {offsets = [0, 96], sizes = [8, 32], strides = [1, 1]} : vector<8x128xf32> to vector<8x32xf32>
    %cst_56 = arith.constant 5.000000e-01 : f32
    %175 = vector.broadcast %cst_56 : f32 to vector<8x32xf32>
    %176 = arith.mulf %174, %175 : vector<8x32xf32>
    %cst_57 = arith.constant 5.000000e-01 : f32
    %177 = vector.broadcast %cst_57 : f32 to vector<8x32xf32>
    %178 = arith.addf %176, %177 : vector<8x32xf32>
    %179 = arith.mulf %172, %156 : vector<8x32xf32>
    %180 = arith.mulf %167, %173 : vector<8x32xf32>
    %181 = arith.addf %179, %180 : vector<8x32xf32>
    %182 = math.tanh %181 : vector<8x32xf32>
    %183 = arith.mulf %178, %182 : vector<8x32xf32>
    %184 = vector.extract_strided_slice %6 {offsets = [56, 0], sizes = [8, 128], strides = [1, 1]} : vector<64x128xf32> to vector<8x128xf32>
    %cst_58 = arith.constant dense<0.000000e+00> : vector<8x128xf32>
    %185 = tpu.matmul %183, %2, %cst_58 {dimension_numbers = #tpu.dot_dimension_numbers<[1], [0], [0], [1], [0, 0, 1, 1], [], []>} : vector<8x32xf32>, vector<32x128xf32>, vector<8x128xf32> -> vector<8x128xf32>
    %186 = arith.addf %184, %185 : vector<8x128xf32>
    %187 = math.tanh %186 : vector<8x128xf32>
    %188 = vector.extract_strided_slice %187 {offsets = [0, 0], sizes = [8, 32], strides = [1, 1]} : vector<8x128xf32> to vector<8x32xf32>
    %cst_59 = arith.constant 5.000000e-01 : f32
    %189 = vector.broadcast %cst_59 : f32 to vector<8x32xf32>
    %190 = arith.mulf %188, %189 : vector<8x32xf32>
    %cst_60 = arith.constant 5.000000e-01 : f32
    %191 = vector.broadcast %cst_60 : f32 to vector<8x32xf32>
    %192 = arith.addf %190, %191 : vector<8x32xf32>
    %193 = vector.extract_strided_slice %187 {offsets = [0, 32], sizes = [8, 32], strides = [1, 1]} : vector<8x128xf32> to vector<8x32xf32>
    %cst_61 = arith.constant 5.000000e-01 : f32
    %194 = vector.broadcast %cst_61 : f32 to vector<8x32xf32>
    %195 = arith.mulf %193, %194 : vector<8x32xf32>
    %cst_62 = arith.constant 5.000000e-01 : f32
    %196 = vector.broadcast %cst_62 : f32 to vector<8x32xf32>
    %197 = arith.addf %195, %196 : vector<8x32xf32>
    %198 = vector.extract_strided_slice %187 {offsets = [0, 64], sizes = [8, 32], strides = [1, 1]} : vector<8x128xf32> to vector<8x32xf32>
    %199 = vector.extract_strided_slice %187 {offsets = [0, 96], sizes = [8, 32], strides = [1, 1]} : vector<8x128xf32> to vector<8x32xf32>
    %cst_63 = arith.constant 5.000000e-01 : f32
    %200 = vector.broadcast %cst_63 : f32 to vector<8x32xf32>
    %201 = arith.mulf %199, %200 : vector<8x32xf32>
    %cst_64 = arith.constant 5.000000e-01 : f32
    %202 = vector.broadcast %cst_64 : f32 to vector<8x32xf32>
    %203 = arith.addf %201, %202 : vector<8x32xf32>
    %204 = arith.mulf %197, %181 : vector<8x32xf32>
    %205 = arith.mulf %192, %198 : vector<8x32xf32>
    %206 = arith.addf %204, %205 : vector<8x32xf32>
    %207 = math.tanh %206 : vector<8x32xf32>
    %208 = arith.mulf %203, %207 : vector<8x32xf32>
    %209 = tpu.concatenate %33, %58, %83, %108, %133, %158, %183, %208 in 0 : vector<8x32xf32>, vector<8x32xf32>, vector<8x32xf32>, vector<8x32xf32>, vector<8x32xf32>, vector<8x32xf32>, vector<8x32xf32>, vector<8x32xf32> -> vector<64x32xf32>
    %c0_65 = arith.constant 0 : index
    %c0_66 = arith.constant 0 : index
    %210 = vector.load %arg5[%c0_65, %c0_66] : memref<32x128xf32, #tpu.memory_space<vmem>>, vector<32x128xf32>
    %c0_67 = arith.constant 0 : index
    %c0_68 = arith.constant 0 : index
    %211 = vector.load %arg6[%c0_67, %c0_68] : memref<32x128xf32, #tpu.memory_space<vmem>>, vector<32x128xf32>
    %c0_69 = arith.constant 0 : index
    %c0_70 = arith.constant 0 : index
    %212 = vector.load %arg7[%c0_69, %c0_70] : memref<1x128xf32, #tpu.memory_space<vmem>>, vector<1x128xf32>
    %cst_71 = arith.constant dense<0.000000e+00> : vector<64x128xf32>
    %213 = tpu.matmul %209, %210, %cst_71 {dimension_numbers = #tpu.dot_dimension_numbers<[1], [0], [0], [1], [0, 0, 1, 1], [], []>} : vector<64x32xf32>, vector<32x128xf32>, vector<64x128xf32> -> vector<64x128xf32>
    %214 = vector.broadcast %212 : vector<1x128xf32> to vector<64x128xf32>
    %215 = arith.addf %213, %214 : vector<64x128xf32>
    %cst_72 = arith.constant 0.000000e+00 : f32
    %216 = vector.broadcast %cst_72 : f32 to vector<8x32xf32>
    %cst_73 = arith.constant 0.000000e+00 : f32
    %217 = vector.broadcast %cst_73 : f32 to vector<8x32xf32>
    %218 = vector.extract_strided_slice %215 {offsets = [0, 0], sizes = [8, 128], strides = [1, 1]} : vector<64x128xf32> to vector<8x128xf32>
    %cst_74 = arith.constant dense<0.000000e+00> : vector<8x128xf32>
    %219 = tpu.matmul %216, %211, %cst_74 {dimension_numbers = #tpu.dot_dimension_numbers<[1], [0], [0], [1], [0, 0, 1, 1], [], []>} : vector<8x32xf32>, vector<32x128xf32>, vector<8x128xf32> -> vector<8x128xf32>
    %220 = arith.addf %218, %219 : vector<8x128xf32>
    %221 = math.tanh %220 : vector<8x128xf32>
    %222 = vector.extract_strided_slice %221 {offsets = [0, 0], sizes = [8, 32], strides = [1, 1]} : vector<8x128xf32> to vector<8x32xf32>
    %cst_75 = arith.constant 5.000000e-01 : f32
    %223 = vector.broadcast %cst_75 : f32 to vector<8x32xf32>
    %224 = arith.mulf %222, %223 : vector<8x32xf32>
    %cst_76 = arith.constant 5.000000e-01 : f32
    %225 = vector.broadcast %cst_76 : f32 to vector<8x32xf32>
    %226 = arith.addf %224, %225 : vector<8x32xf32>
    %227 = vector.extract_strided_slice %221 {offsets = [0, 32], sizes = [8, 32], strides = [1, 1]} : vector<8x128xf32> to vector<8x32xf32>
    %cst_77 = arith.constant 5.000000e-01 : f32
    %228 = vector.broadcast %cst_77 : f32 to vector<8x32xf32>
    %229 = arith.mulf %227, %228 : vector<8x32xf32>
    %cst_78 = arith.constant 5.000000e-01 : f32
    %230 = vector.broadcast %cst_78 : f32 to vector<8x32xf32>
    %231 = arith.addf %229, %230 : vector<8x32xf32>
    %232 = vector.extract_strided_slice %221 {offsets = [0, 64], sizes = [8, 32], strides = [1, 1]} : vector<8x128xf32> to vector<8x32xf32>
    %233 = vector.extract_strided_slice %221 {offsets = [0, 96], sizes = [8, 32], strides = [1, 1]} : vector<8x128xf32> to vector<8x32xf32>
    %cst_79 = arith.constant 5.000000e-01 : f32
    %234 = vector.broadcast %cst_79 : f32 to vector<8x32xf32>
    %235 = arith.mulf %233, %234 : vector<8x32xf32>
    %cst_80 = arith.constant 5.000000e-01 : f32
    %236 = vector.broadcast %cst_80 : f32 to vector<8x32xf32>
    %237 = arith.addf %235, %236 : vector<8x32xf32>
    %238 = arith.mulf %231, %217 : vector<8x32xf32>
    %239 = arith.mulf %226, %232 : vector<8x32xf32>
    %240 = arith.addf %238, %239 : vector<8x32xf32>
    %241 = math.tanh %240 : vector<8x32xf32>
    %242 = arith.mulf %237, %241 : vector<8x32xf32>
    %243 = vector.extract_strided_slice %215 {offsets = [8, 0], sizes = [8, 128], strides = [1, 1]} : vector<64x128xf32> to vector<8x128xf32>
    %cst_81 = arith.constant dense<0.000000e+00> : vector<8x128xf32>
    %244 = tpu.matmul %242, %211, %cst_81 {dimension_numbers = #tpu.dot_dimension_numbers<[1], [0], [0], [1], [0, 0, 1, 1], [], []>} : vector<8x32xf32>, vector<32x128xf32>, vector<8x128xf32> -> vector<8x128xf32>
    %245 = arith.addf %243, %244 : vector<8x128xf32>
    %246 = math.tanh %245 : vector<8x128xf32>
    %247 = vector.extract_strided_slice %246 {offsets = [0, 0], sizes = [8, 32], strides = [1, 1]} : vector<8x128xf32> to vector<8x32xf32>
    %cst_82 = arith.constant 5.000000e-01 : f32
    %248 = vector.broadcast %cst_82 : f32 to vector<8x32xf32>
    %249 = arith.mulf %247, %248 : vector<8x32xf32>
    %cst_83 = arith.constant 5.000000e-01 : f32
    %250 = vector.broadcast %cst_83 : f32 to vector<8x32xf32>
    %251 = arith.addf %249, %250 : vector<8x32xf32>
    %252 = vector.extract_strided_slice %246 {offsets = [0, 32], sizes = [8, 32], strides = [1, 1]} : vector<8x128xf32> to vector<8x32xf32>
    %cst_84 = arith.constant 5.000000e-01 : f32
    %253 = vector.broadcast %cst_84 : f32 to vector<8x32xf32>
    %254 = arith.mulf %252, %253 : vector<8x32xf32>
    %cst_85 = arith.constant 5.000000e-01 : f32
    %255 = vector.broadcast %cst_85 : f32 to vector<8x32xf32>
    %256 = arith.addf %254, %255 : vector<8x32xf32>
    %257 = vector.extract_strided_slice %246 {offsets = [0, 64], sizes = [8, 32], strides = [1, 1]} : vector<8x128xf32> to vector<8x32xf32>
    %258 = vector.extract_strided_slice %246 {offsets = [0, 96], sizes = [8, 32], strides = [1, 1]} : vector<8x128xf32> to vector<8x32xf32>
    %cst_86 = arith.constant 5.000000e-01 : f32
    %259 = vector.broadcast %cst_86 : f32 to vector<8x32xf32>
    %260 = arith.mulf %258, %259 : vector<8x32xf32>
    %cst_87 = arith.constant 5.000000e-01 : f32
    %261 = vector.broadcast %cst_87 : f32 to vector<8x32xf32>
    %262 = arith.addf %260, %261 : vector<8x32xf32>
    %263 = arith.mulf %256, %240 : vector<8x32xf32>
    %264 = arith.mulf %251, %257 : vector<8x32xf32>
    %265 = arith.addf %263, %264 : vector<8x32xf32>
    %266 = math.tanh %265 : vector<8x32xf32>
    %267 = arith.mulf %262, %266 : vector<8x32xf32>
    %268 = vector.extract_strided_slice %215 {offsets = [16, 0], sizes = [8, 128], strides = [1, 1]} : vector<64x128xf32> to vector<8x128xf32>
    %cst_88 = arith.constant dense<0.000000e+00> : vector<8x128xf32>
    %269 = tpu.matmul %267, %211, %cst_88 {dimension_numbers = #tpu.dot_dimension_numbers<[1], [0], [0], [1], [0, 0, 1, 1], [], []>} : vector<8x32xf32>, vector<32x128xf32>, vector<8x128xf32> -> vector<8x128xf32>
    %270 = arith.addf %268, %269 : vector<8x128xf32>
    %271 = math.tanh %270 : vector<8x128xf32>
    %272 = vector.extract_strided_slice %271 {offsets = [0, 0], sizes = [8, 32], strides = [1, 1]} : vector<8x128xf32> to vector<8x32xf32>
    %cst_89 = arith.constant 5.000000e-01 : f32
    %273 = vector.broadcast %cst_89 : f32 to vector<8x32xf32>
    %274 = arith.mulf %272, %273 : vector<8x32xf32>
    %cst_90 = arith.constant 5.000000e-01 : f32
    %275 = vector.broadcast %cst_90 : f32 to vector<8x32xf32>
    %276 = arith.addf %274, %275 : vector<8x32xf32>
    %277 = vector.extract_strided_slice %271 {offsets = [0, 32], sizes = [8, 32], strides = [1, 1]} : vector<8x128xf32> to vector<8x32xf32>
    %cst_91 = arith.constant 5.000000e-01 : f32
    %278 = vector.broadcast %cst_91 : f32 to vector<8x32xf32>
    %279 = arith.mulf %277, %278 : vector<8x32xf32>
    %cst_92 = arith.constant 5.000000e-01 : f32
    %280 = vector.broadcast %cst_92 : f32 to vector<8x32xf32>
    %281 = arith.addf %279, %280 : vector<8x32xf32>
    %282 = vector.extract_strided_slice %271 {offsets = [0, 64], sizes = [8, 32], strides = [1, 1]} : vector<8x128xf32> to vector<8x32xf32>
    %283 = vector.extract_strided_slice %271 {offsets = [0, 96], sizes = [8, 32], strides = [1, 1]} : vector<8x128xf32> to vector<8x32xf32>
    %cst_93 = arith.constant 5.000000e-01 : f32
    %284 = vector.broadcast %cst_93 : f32 to vector<8x32xf32>
    %285 = arith.mulf %283, %284 : vector<8x32xf32>
    %cst_94 = arith.constant 5.000000e-01 : f32
    %286 = vector.broadcast %cst_94 : f32 to vector<8x32xf32>
    %287 = arith.addf %285, %286 : vector<8x32xf32>
    %288 = arith.mulf %281, %265 : vector<8x32xf32>
    %289 = arith.mulf %276, %282 : vector<8x32xf32>
    %290 = arith.addf %288, %289 : vector<8x32xf32>
    %291 = math.tanh %290 : vector<8x32xf32>
    %292 = arith.mulf %287, %291 : vector<8x32xf32>
    %293 = vector.extract_strided_slice %215 {offsets = [24, 0], sizes = [8, 128], strides = [1, 1]} : vector<64x128xf32> to vector<8x128xf32>
    %cst_95 = arith.constant dense<0.000000e+00> : vector<8x128xf32>
    %294 = tpu.matmul %292, %211, %cst_95 {dimension_numbers = #tpu.dot_dimension_numbers<[1], [0], [0], [1], [0, 0, 1, 1], [], []>} : vector<8x32xf32>, vector<32x128xf32>, vector<8x128xf32> -> vector<8x128xf32>
    %295 = arith.addf %293, %294 : vector<8x128xf32>
    %296 = math.tanh %295 : vector<8x128xf32>
    %297 = vector.extract_strided_slice %296 {offsets = [0, 0], sizes = [8, 32], strides = [1, 1]} : vector<8x128xf32> to vector<8x32xf32>
    %cst_96 = arith.constant 5.000000e-01 : f32
    %298 = vector.broadcast %cst_96 : f32 to vector<8x32xf32>
    %299 = arith.mulf %297, %298 : vector<8x32xf32>
    %cst_97 = arith.constant 5.000000e-01 : f32
    %300 = vector.broadcast %cst_97 : f32 to vector<8x32xf32>
    %301 = arith.addf %299, %300 : vector<8x32xf32>
    %302 = vector.extract_strided_slice %296 {offsets = [0, 32], sizes = [8, 32], strides = [1, 1]} : vector<8x128xf32> to vector<8x32xf32>
    %cst_98 = arith.constant 5.000000e-01 : f32
    %303 = vector.broadcast %cst_98 : f32 to vector<8x32xf32>
    %304 = arith.mulf %302, %303 : vector<8x32xf32>
    %cst_99 = arith.constant 5.000000e-01 : f32
    %305 = vector.broadcast %cst_99 : f32 to vector<8x32xf32>
    %306 = arith.addf %304, %305 : vector<8x32xf32>
    %307 = vector.extract_strided_slice %296 {offsets = [0, 64], sizes = [8, 32], strides = [1, 1]} : vector<8x128xf32> to vector<8x32xf32>
    %308 = vector.extract_strided_slice %296 {offsets = [0, 96], sizes = [8, 32], strides = [1, 1]} : vector<8x128xf32> to vector<8x32xf32>
    %cst_100 = arith.constant 5.000000e-01 : f32
    %309 = vector.broadcast %cst_100 : f32 to vector<8x32xf32>
    %310 = arith.mulf %308, %309 : vector<8x32xf32>
    %cst_101 = arith.constant 5.000000e-01 : f32
    %311 = vector.broadcast %cst_101 : f32 to vector<8x32xf32>
    %312 = arith.addf %310, %311 : vector<8x32xf32>
    %313 = arith.mulf %306, %290 : vector<8x32xf32>
    %314 = arith.mulf %301, %307 : vector<8x32xf32>
    %315 = arith.addf %313, %314 : vector<8x32xf32>
    %316 = math.tanh %315 : vector<8x32xf32>
    %317 = arith.mulf %312, %316 : vector<8x32xf32>
    %318 = vector.extract_strided_slice %215 {offsets = [32, 0], sizes = [8, 128], strides = [1, 1]} : vector<64x128xf32> to vector<8x128xf32>
    %cst_102 = arith.constant dense<0.000000e+00> : vector<8x128xf32>
    %319 = tpu.matmul %317, %211, %cst_102 {dimension_numbers = #tpu.dot_dimension_numbers<[1], [0], [0], [1], [0, 0, 1, 1], [], []>} : vector<8x32xf32>, vector<32x128xf32>, vector<8x128xf32> -> vector<8x128xf32>
    %320 = arith.addf %318, %319 : vector<8x128xf32>
    %321 = math.tanh %320 : vector<8x128xf32>
    %322 = vector.extract_strided_slice %321 {offsets = [0, 0], sizes = [8, 32], strides = [1, 1]} : vector<8x128xf32> to vector<8x32xf32>
    %cst_103 = arith.constant 5.000000e-01 : f32
    %323 = vector.broadcast %cst_103 : f32 to vector<8x32xf32>
    %324 = arith.mulf %322, %323 : vector<8x32xf32>
    %cst_104 = arith.constant 5.000000e-01 : f32
    %325 = vector.broadcast %cst_104 : f32 to vector<8x32xf32>
    %326 = arith.addf %324, %325 : vector<8x32xf32>
    %327 = vector.extract_strided_slice %321 {offsets = [0, 32], sizes = [8, 32], strides = [1, 1]} : vector<8x128xf32> to vector<8x32xf32>
    %cst_105 = arith.constant 5.000000e-01 : f32
    %328 = vector.broadcast %cst_105 : f32 to vector<8x32xf32>
    %329 = arith.mulf %327, %328 : vector<8x32xf32>
    %cst_106 = arith.constant 5.000000e-01 : f32
    %330 = vector.broadcast %cst_106 : f32 to vector<8x32xf32>
    %331 = arith.addf %329, %330 : vector<8x32xf32>
    %332 = vector.extract_strided_slice %321 {offsets = [0, 64], sizes = [8, 32], strides = [1, 1]} : vector<8x128xf32> to vector<8x32xf32>
    %333 = vector.extract_strided_slice %321 {offsets = [0, 96], sizes = [8, 32], strides = [1, 1]} : vector<8x128xf32> to vector<8x32xf32>
    %cst_107 = arith.constant 5.000000e-01 : f32
    %334 = vector.broadcast %cst_107 : f32 to vector<8x32xf32>
    %335 = arith.mulf %333, %334 : vector<8x32xf32>
    %cst_108 = arith.constant 5.000000e-01 : f32
    %336 = vector.broadcast %cst_108 : f32 to vector<8x32xf32>
    %337 = arith.addf %335, %336 : vector<8x32xf32>
    %338 = arith.mulf %331, %315 : vector<8x32xf32>
    %339 = arith.mulf %326, %332 : vector<8x32xf32>
    %340 = arith.addf %338, %339 : vector<8x32xf32>
    %341 = math.tanh %340 : vector<8x32xf32>
    %342 = arith.mulf %337, %341 : vector<8x32xf32>
    %343 = vector.extract_strided_slice %215 {offsets = [40, 0], sizes = [8, 128], strides = [1, 1]} : vector<64x128xf32> to vector<8x128xf32>
    %cst_109 = arith.constant dense<0.000000e+00> : vector<8x128xf32>
    %344 = tpu.matmul %342, %211, %cst_109 {dimension_numbers = #tpu.dot_dimension_numbers<[1], [0], [0], [1], [0, 0, 1, 1], [], []>} : vector<8x32xf32>, vector<32x128xf32>, vector<8x128xf32> -> vector<8x128xf32>
    %345 = arith.addf %343, %344 : vector<8x128xf32>
    %346 = math.tanh %345 : vector<8x128xf32>
    %347 = vector.extract_strided_slice %346 {offsets = [0, 0], sizes = [8, 32], strides = [1, 1]} : vector<8x128xf32> to vector<8x32xf32>
    %cst_110 = arith.constant 5.000000e-01 : f32
    %348 = vector.broadcast %cst_110 : f32 to vector<8x32xf32>
    %349 = arith.mulf %347, %348 : vector<8x32xf32>
    %cst_111 = arith.constant 5.000000e-01 : f32
    %350 = vector.broadcast %cst_111 : f32 to vector<8x32xf32>
    %351 = arith.addf %349, %350 : vector<8x32xf32>
    %352 = vector.extract_strided_slice %346 {offsets = [0, 32], sizes = [8, 32], strides = [1, 1]} : vector<8x128xf32> to vector<8x32xf32>
    %cst_112 = arith.constant 5.000000e-01 : f32
    %353 = vector.broadcast %cst_112 : f32 to vector<8x32xf32>
    %354 = arith.mulf %352, %353 : vector<8x32xf32>
    %cst_113 = arith.constant 5.000000e-01 : f32
    %355 = vector.broadcast %cst_113 : f32 to vector<8x32xf32>
    %356 = arith.addf %354, %355 : vector<8x32xf32>
    %357 = vector.extract_strided_slice %346 {offsets = [0, 64], sizes = [8, 32], strides = [1, 1]} : vector<8x128xf32> to vector<8x32xf32>
    %358 = vector.extract_strided_slice %346 {offsets = [0, 96], sizes = [8, 32], strides = [1, 1]} : vector<8x128xf32> to vector<8x32xf32>
    %cst_114 = arith.constant 5.000000e-01 : f32
    %359 = vector.broadcast %cst_114 : f32 to vector<8x32xf32>
    %360 = arith.mulf %358, %359 : vector<8x32xf32>
    %cst_115 = arith.constant 5.000000e-01 : f32
    %361 = vector.broadcast %cst_115 : f32 to vector<8x32xf32>
    %362 = arith.addf %360, %361 : vector<8x32xf32>
    %363 = arith.mulf %356, %340 : vector<8x32xf32>
    %364 = arith.mulf %351, %357 : vector<8x32xf32>
    %365 = arith.addf %363, %364 : vector<8x32xf32>
    %366 = math.tanh %365 : vector<8x32xf32>
    %367 = arith.mulf %362, %366 : vector<8x32xf32>
    %368 = vector.extract_strided_slice %215 {offsets = [48, 0], sizes = [8, 128], strides = [1, 1]} : vector<64x128xf32> to vector<8x128xf32>
    %cst_116 = arith.constant dense<0.000000e+00> : vector<8x128xf32>
    %369 = tpu.matmul %367, %211, %cst_116 {dimension_numbers = #tpu.dot_dimension_numbers<[1], [0], [0], [1], [0, 0, 1, 1], [], []>} : vector<8x32xf32>, vector<32x128xf32>, vector<8x128xf32> -> vector<8x128xf32>
    %370 = arith.addf %368, %369 : vector<8x128xf32>
    %371 = math.tanh %370 : vector<8x128xf32>
    %372 = vector.extract_strided_slice %371 {offsets = [0, 0], sizes = [8, 32], strides = [1, 1]} : vector<8x128xf32> to vector<8x32xf32>
    %cst_117 = arith.constant 5.000000e-01 : f32
    %373 = vector.broadcast %cst_117 : f32 to vector<8x32xf32>
    %374 = arith.mulf %372, %373 : vector<8x32xf32>
    %cst_118 = arith.constant 5.000000e-01 : f32
    %375 = vector.broadcast %cst_118 : f32 to vector<8x32xf32>
    %376 = arith.addf %374, %375 : vector<8x32xf32>
    %377 = vector.extract_strided_slice %371 {offsets = [0, 32], sizes = [8, 32], strides = [1, 1]} : vector<8x128xf32> to vector<8x32xf32>
    %cst_119 = arith.constant 5.000000e-01 : f32
    %378 = vector.broadcast %cst_119 : f32 to vector<8x32xf32>
    %379 = arith.mulf %377, %378 : vector<8x32xf32>
    %cst_120 = arith.constant 5.000000e-01 : f32
    %380 = vector.broadcast %cst_120 : f32 to vector<8x32xf32>
    %381 = arith.addf %379, %380 : vector<8x32xf32>
    %382 = vector.extract_strided_slice %371 {offsets = [0, 64], sizes = [8, 32], strides = [1, 1]} : vector<8x128xf32> to vector<8x32xf32>
    %383 = vector.extract_strided_slice %371 {offsets = [0, 96], sizes = [8, 32], strides = [1, 1]} : vector<8x128xf32> to vector<8x32xf32>
    %cst_121 = arith.constant 5.000000e-01 : f32
    %384 = vector.broadcast %cst_121 : f32 to vector<8x32xf32>
    %385 = arith.mulf %383, %384 : vector<8x32xf32>
    %cst_122 = arith.constant 5.000000e-01 : f32
    %386 = vector.broadcast %cst_122 : f32 to vector<8x32xf32>
    %387 = arith.addf %385, %386 : vector<8x32xf32>
    %388 = arith.mulf %381, %365 : vector<8x32xf32>
    %389 = arith.mulf %376, %382 : vector<8x32xf32>
    %390 = arith.addf %388, %389 : vector<8x32xf32>
    %391 = math.tanh %390 : vector<8x32xf32>
    %392 = arith.mulf %387, %391 : vector<8x32xf32>
    %393 = vector.extract_strided_slice %215 {offsets = [56, 0], sizes = [8, 128], strides = [1, 1]} : vector<64x128xf32> to vector<8x128xf32>
    %cst_123 = arith.constant dense<0.000000e+00> : vector<8x128xf32>
    %394 = tpu.matmul %392, %211, %cst_123 {dimension_numbers = #tpu.dot_dimension_numbers<[1], [0], [0], [1], [0, 0, 1, 1], [], []>} : vector<8x32xf32>, vector<32x128xf32>, vector<8x128xf32> -> vector<8x128xf32>
    %395 = arith.addf %393, %394 : vector<8x128xf32>
    %396 = math.tanh %395 : vector<8x128xf32>
    %397 = vector.extract_strided_slice %396 {offsets = [0, 0], sizes = [8, 32], strides = [1, 1]} : vector<8x128xf32> to vector<8x32xf32>
    %cst_124 = arith.constant 5.000000e-01 : f32
    %398 = vector.broadcast %cst_124 : f32 to vector<8x32xf32>
    %399 = arith.mulf %397, %398 : vector<8x32xf32>
    %cst_125 = arith.constant 5.000000e-01 : f32
    %400 = vector.broadcast %cst_125 : f32 to vector<8x32xf32>
    %401 = arith.addf %399, %400 : vector<8x32xf32>
    %402 = vector.extract_strided_slice %396 {offsets = [0, 32], sizes = [8, 32], strides = [1, 1]} : vector<8x128xf32> to vector<8x32xf32>
    %cst_126 = arith.constant 5.000000e-01 : f32
    %403 = vector.broadcast %cst_126 : f32 to vector<8x32xf32>
    %404 = arith.mulf %402, %403 : vector<8x32xf32>
    %cst_127 = arith.constant 5.000000e-01 : f32
    %405 = vector.broadcast %cst_127 : f32 to vector<8x32xf32>
    %406 = arith.addf %404, %405 : vector<8x32xf32>
    %407 = vector.extract_strided_slice %396 {offsets = [0, 64], sizes = [8, 32], strides = [1, 1]} : vector<8x128xf32> to vector<8x32xf32>
    %408 = vector.extract_strided_slice %396 {offsets = [0, 96], sizes = [8, 32], strides = [1, 1]} : vector<8x128xf32> to vector<8x32xf32>
    %cst_128 = arith.constant 5.000000e-01 : f32
    %409 = vector.broadcast %cst_128 : f32 to vector<8x32xf32>
    %410 = arith.mulf %408, %409 : vector<8x32xf32>
    %cst_129 = arith.constant 5.000000e-01 : f32
    %411 = vector.broadcast %cst_129 : f32 to vector<8x32xf32>
    %412 = arith.addf %410, %411 : vector<8x32xf32>
    %413 = arith.mulf %406, %390 : vector<8x32xf32>
    %414 = arith.mulf %401, %407 : vector<8x32xf32>
    %415 = arith.addf %413, %414 : vector<8x32xf32>
    %416 = math.tanh %415 : vector<8x32xf32>
    %417 = arith.mulf %412, %416 : vector<8x32xf32>
    %c0_130 = arith.constant 0 : index
    %c0_131 = arith.constant 0 : index
    %418 = vector.load %arg8[%c0_130, %c0_131] : memref<8x32xf32, #tpu.memory_space<vmem>>, vector<8x32xf32>
    tpu.vector_store %arg8[%c0_130, %c0_131], %417 {strides = array<i32>} : memref<8x32xf32, #tpu.memory_space<vmem>>, vector<8x32xf32>,
    return
  }
  func.func @transform_0(%arg0: i32) -> (i32, i32) {
    %c0_i32 = arith.constant 0 : i32
    %c0_i32_0 = arith.constant 0 : i32
    %c0_i32_1 = arith.constant 0 : i32
    return %c0_i32, %c0_i32_0 : i32, i32
  }
  func.func @transform_1(%arg0: i32) -> (i32, i32) {
    %c0_i32 = arith.constant 0 : i32
    %c0_i32_0 = arith.constant 0 : i32
    %c0_i32_1 = arith.constant 0 : i32
    return %c0_i32, %c0_i32_0 : i32, i32
  }
  func.func @transform_2(%arg0: i32) -> (i32, i32) {
    %c0_i32 = arith.constant 0 : i32
    %c0_i32_0 = arith.constant 0 : i32
    %c0_i32_1 = arith.constant 0 : i32
    return %c0_i32, %c0_i32_0 : i32, i32
  }
  func.func @transform_3(%arg0: i32) -> (i32, i32) {
    %c0_i32 = arith.constant 0 : i32
    %c0_i32_0 = arith.constant 0 : i32
    %c0_i32_1 = arith.constant 0 : i32
    return %c0_i32, %c0_i32_0 : i32, i32
  }
  func.func @transform_4(%arg0: i32) -> (i32, i32) {
    %c0_i32 = arith.constant 0 : i32
    %c0_i32_0 = arith.constant 0 : i32
    %c0_i32_1 = arith.constant 0 : i32
    return %c0_i32, %c0_i32_0 : i32, i32
  }
  func.func @transform_5(%arg0: i32) -> (i32, i32) {
    %c0_i32 = arith.constant 0 : i32
    %c0_i32_0 = arith.constant 0 : i32
    %c0_i32_1 = arith.constant 0 : i32
    return %c0_i32, %c0_i32_0 : i32, i32
  }
  func.func @transform_6(%arg0: i32) -> (i32, i32) {
    %c0_i32 = arith.constant 0 : i32
    %c0_i32_0 = arith.constant 0 : i32
    %c0_i32_1 = arith.constant 0 : i32
    return %c0_i32, %c0_i32_0 : i32, i32
  }
  func.func @transform_7(%arg0: i32) -> (i32, i32) {
    %c0_i32 = arith.constant 0 : i32
    %c0_i32_0 = arith.constant 0 : i32
    %c0_i32_1 = arith.constant 0 : i32
    return %c0_i32, %c0_i32_0 : i32, i32
  }
}

</mosaic_0001>

<bundles_post_ra>
// kernel: encoder_rnn_forward.1
= control target key start
LH: loop header
LB: loop body
LE: loop exit
PB: predicated region body
PF: predicated region fallthrough
CT: control target
= control target key end

     0   :  { %vm45_vm0 = vcmask 130048   ;;  %s1369_s0 = inlined_call_operand.vmem [shape: f32[64,16], index: 0, kind: input, shape index: {}]   ;;  %s1370_s1 = inlined_call_operand.vmem [shape: f32[16,128], index: 1, kind: input, shape index: {}]   ;;  %s1371_s2 = inlined_call_operand.vmem [shape: f32[32,128], index: 2, kind: input, shape index: {}]   ;;  %s1372_s3 = inlined_call_operand.vmem [shape: f32[1,128], index: 3, kind: input, shape index: {}]   ;;  %s1373_s4 = inlined_call_operand.vmem [shape: f32[32,128], index: 4, kind: input, shape index: {}]   ;;  %s1374_s5 = inlined_call_operand.vmem [shape: f32[32,128], index: 5, kind: input, shape index: {}]   ;;  %s1375_s6 = inlined_call_operand.vmem [shape: f32[1,128], index: 6, kind: input, shape index: {}]   ;;  %s1376_s7 = inlined_call_operand.hbm [shape: f32[8,32], index: 7, kind: output, shape index: {}]  }
   0x1   :  { %v1093_v0 = vld [vmem:[%s1371_s2 + $0x18] sm:$0xff]  ;;  %v36_v1 = vld [vmem:[%s1370_s1 + $0x8] sm:$0xff]  ;;  %v1101_v2 = vld [vmem:[%s1371_s2 + $0x10] sm:$0xff] }
   0x2   :  { %127 = vmatpush.msra.mxu1 %v1093_v0  ;;  %84 = vmatpush.msra.mxu0 %v36_v1  ;;  %v35_v3 = vld [vmem:[%s1370_s1] sm:$0xff]  ;;  %v1113_v5 = vld [vmem:[%s1371_s2 + $0x8] sm:$0xff] }
   0x3   :  { %v27_v4 = vld [vmem:[%s1369_s0] sm:$0xff]  ;;  %173 = vmatpush.msra.mxu2 %v1093_v0 }
   0x4   :  { %128 = vmatpush.msra.mxu1 %v1101_v2  ;;  %85 = vmatpush.msra.mxu0 %v35_v3 }
   0x5   :  { %12 = vsyncpa [#allocation3], 0  ;;  %920 = vmatmul.msk.f32.vlgmr.msra.gmra.mxu0 %vm45_vm0, %v27_v4  ;;  %v1121_v6 = vld [vmem:[%s1371_s2] sm:$0xff]  ;;  %174 = vmatpush.msra.mxu2 %v1101_v2  ;;  %v1046_v7 = vmov 0.0   ;;  %s1047_s15 = smov 64   ;;  %s1048_s16 = smov 32  }
   0x6   :  { %129 = vmatpush.msra.mxu1 %v1113_v5  ;;  %v1144_v8 = vld [vmem:[%s1372_s3] ss:$0 sm:$0xff]  ;;  %v481_v22 = vld [vmem:[%s1373_s4 + $0x18] sm:$0xff]  ;;  %v480_v23 = vld [vmem:[%s1373_s4 + $0x10] sm:$0xff]  ;;  %vm111_vm1 = vcmask 261120   ;;  %s911_s24 = sshll.u32 %s1376_s7, 4  ;;  %s912_s24 = int_to_ptr.hbm [resolvable:$true] %s911_s24 }
   0x7   :  { %175 = vmatpush.msra.mxu2 %v1113_v5  ;;  %507 = vmatpush.msra.mxu3 %v481_v22  ;;  %v479_v24 = vld [vmem:[%s1373_s4 + $0x8] sm:$0xff]  ;;  %v478_v25 = vld [vmem:[%s1373_s4] sm:$0xff]  ;;  %v29_v43 = vld [vmem:[%s1369_s0 + $0x10] sm:$0xff] }
   0x8   :  { %130 = vmatpush.msra.mxu1 %v1121_v6  ;;  %v28_v28 = vld [vmem:[%s1369_s0 + $0x8] sm:$0xff]  ;;  %v30_v60 = vld [vmem:[%s1369_s0 + $0x18] sm:$0xff] }
   0x9   :  { %131 = vmatmul.f32.vlgmr.msra.gmra.mxu1 %v1046_v7  ;;  %176 = vmatpush.msra.mxu2 %v1121_v6 }
   0xa   :  { %219 = vmatpush.msrb.mxu1 %v1093_v0  ;;  %508 = vmatpush.msra.mxu3 %v480_v23 }
   0xb   :  { %311 = vmatpush.msrb.mxu2 %v1093_v0 }
   0xc   :  { %220 = vmatpush.msrb.mxu1 %v1101_v2  ;;  %509 = vmatpush.msra.mxu3 %v479_v24 }
   0xd   :  { %312 = vmatpush.msrb.mxu2 %v1101_v2  ;;  %921 = vmatmul.msk.f32.gmra.mxu0 %vm45_vm0, %v28_v28 }
   0xe   :  { %221 = vmatpush.msrb.mxu1 %v1113_v5  ;;  %510 = vmatpush.msra.mxu3 %v478_v25 }
   0xf   :  { %313 = vmatpush.msrb.mxu2 %v1113_v5 }
  0x10   :  { %222 = vmatpush.msrb.mxu1 %v1121_v6 }
  0x11   :  { %314 = vmatpush.msrb.mxu2 %v1121_v6 }
  0x12   :  { %265 = vmatpush.msra.mxu1 %v1093_v0 }
  0x14   :  { %266 = vmatpush.msra.mxu1 %v1101_v2 }
  0x15   :  { %922 = vmatmul.msk.f32.gmra.mxu0 %vm45_vm0, %v29_v43 }
  0x16   :  { %267 = vmatpush.msra.mxu1 %v1113_v5 }
  0x18   :  { %268 = vmatpush.msra.mxu1 %v1121_v6 }
  0x1d   :  { %923 = vmatmul.msk.f32.gmra.mxu0 %vm45_vm0, %v30_v60 }
  0x82   :  { %v87_v9 = vpop.f32.mrf.mxu0 }
  0x83   :  { %v88_v10 = vadd.f32 %v1144_v8, %v87_v9 }
  0x86   :  { %v132_v11 = vpop.f32.mrf.mxu1 }
  0x87   :  { %v135_v12 = vadd.f32 %v132_v11, %v88_v10 }
  0x89   :  { %956 = vtanh.f32 %v135_v12 }
  0x8a   :  { %v90_v30 = vpop.f32.mrf.mxu0 }
  0x8b   :  { %v91_v31 = vadd.f32 %v1144_v8, %v90_v30 }
  0x8f   :  { %v957_v13 = vpop.eup %956 }
  0x90   :  { %141 = vrot.lane.b32.xlu0 %v957_v13, %s1047_s15  ;;  %v137_v14 = vmul.f32 0.5, %v957_v13 }
  0x92   :  { %v138_v15 = vadd.f32 0.5, %v137_v14  ;;  %v93_v47 = vpop.f32.mrf.mxu0 }
  0x93   :  { %v94_v48 = vadd.f32 %v1144_v8, %v93_v47 }
  0x94   :  { %v139_v18 = vmul.f32 0.0, %v138_v15 }
  0x9a   :  { %v96_v1 = vpop.f32.mrf.mxu0 }
  0x9b   :  { %v97_v3 = vadd.f32 %v1144_v8, %v96_v1 }
 0x102   :  { %v142_v16 = vpop.permute.xlu0 %141 }
 0x103   :  { %v144_v17 = vmul.f32 %v142_v16, %v138_v15 }
 0x105   :  { %146 = vrot.lane.b32.xlu0 %v144_v17, %s1048_s16 }
 0x177   :  { %v147_v19 = vpop.permute.xlu0 %146 }
 0x178   :  { %v149_v20 = vadd.f32 %v147_v19, %v139_v18 }
 0x17a   :  { %958 = vtanh.f32 %v149_v20 }
 0x180   :  { %v959_v21 = vpop.eup %958 }
 0x181   :  { %152 = vrot.lane.b32.xlu1 %v959_v21, %s1047_s15  ;;  %v31_v21 = vld [vmem:[%s1369_s0 + $0x20] sm:$0xff] }
 0x182   :  { %924 = vmatmul.msk.f32.gmra.mxu0 %vm45_vm0, %v31_v21 }
 0x1f3   :  { %v153_v26 = vpop.permute.xlu1 %152 }
 0x1f4   :  { %v155_v27 = vmul.f32 %v153_v26, %v138_v15 }
 0x1f6   :  { %157 = vrot.lane.b32.xlu1 %v155_v27, %s1048_s16 }
 0x1ff   :  { %v99_v23 = vpop.f32.mrf.mxu0 }
 0x200   :  { %v100_v24 = vadd.f32 %v1144_v8, %v99_v23 }
 0x268   :  { %v158_v29 = vpop.permute.xlu1 %157 }
 0x269   :  { %928 = vmatmul.msk.f32.vlgmr.msra.gmra.mxu2 %vm111_vm1, %v158_v29  ;;  %935 = vmatmul.msk.f32.vlgmr.msra.gmra.mxu3 %vm111_vm1, %v158_v29 }
 0x26a   :  { %357 = vmatpush.msra.mxu2 %v1093_v0 }
 0x26c   :  { %358 = vmatpush.msra.mxu2 %v1101_v2 }
 0x26e   :  { %359 = vmatpush.msra.mxu2 %v1113_v5 }
 0x270   :  { %360 = vmatpush.msra.mxu2 %v1121_v6 }
 0x2ec   :  { %v178_v32 = vpop.f32.mrf.mxu2 }
 0x2ed   :  { %v181_v33 = vadd.f32 %v178_v32, %v91_v31 }
 0x2ef   :  { %960 = vtanh.f32 %v181_v33 }
 0x2f5   :  { %v961_v34 = vpop.eup %960 }
 0x2f6   :  { %187 = vrot.lane.b32.xlu2 %v961_v34, %s1047_s15  ;;  %v183_v35 = vmul.f32 0.5, %v961_v34  ;;  %v32_v34 = vld [vmem:[%s1369_s0 + $0x28] sm:$0xff] }
 0x2f7   :  { %925 = vmatmul.msk.f32.gmra.mxu0 %vm45_vm0, %v32_v34 }
 0x2f8   :  { %v184_v36 = vadd.f32 0.5, %v183_v35 }
 0x2fa   :  { %v185_v39 = vmul.f32 %v184_v36, %v149_v20 }
 0x350   :  { %v188_v37 = vpop.permute.xlu2 %187 }
 0x351   :  { %v190_v38 = vmul.f32 %v188_v37, %v184_v36 }
 0x353   :  { %192 = vrot.lane.b32.xlu2 %v190_v38, %s1048_s16 }
 0x3ad   :  { %v193_v40 = vpop.permute.xlu2 %192 }
 0x3ae   :  { %v195_v41 = vadd.f32 %v193_v40, %v185_v39 }
 0x3b0   :  { %962 = vtanh.f32 %v195_v41 }
 0x3b6   :  { %v963_v42 = vpop.eup %962 }
 0x3b7   :  { %198 = vrot.lane.b32.xlu0 %v963_v42, %s1047_s15 }
 0x429   :  { %v199_v44 = vpop.permute.xlu0 %198 }
 0x42a   :  { %v201_v45 = vmul.f32 %v199_v44, %v184_v36  ;;  %v102_v36 = vpop.f32.mrf.mxu0 }
 0x42b   :  { %v103_v37 = vadd.f32 %v1144_v8, %v102_v36 }
 0x42c   :  { %203 = vrot.lane.b32.xlu1 %v201_v45, %s1048_s16 }
 0x49e   :  { %v204_v46 = vpop.permute.xlu1 %203 }
 0x49f   :  { %929 = vmatmul.msk.f32.vlgmr.msrb.gmra.mxu1 %vm111_vm1, %v204_v46  ;;  %936 = vmatmul.msk.f32.gmra.mxu3 %vm111_vm1, %v204_v46 }
 0x4a0   :  { %403 = vmatpush.msrb.mxu1 %v1093_v0 }
 0x4a2   :  { %404 = vmatpush.msrb.mxu1 %v1101_v2 }
 0x4a4   :  { %405 = vmatpush.msrb.mxu1 %v1113_v5 }
 0x4a6   :  { %406 = vmatpush.msrb.mxu1 %v1121_v6 }
 0x51c   :  { %v224_v49 = vpop.f32.mrf.mxu1 }
 0x51d   :  { %v227_v50 = vadd.f32 %v224_v49, %v94_v48  ;;  %v33_v49 = vld [vmem:[%s1369_s0 + $0x30] sm:$0xff] }
 0x51e   :  { %926 = vmatmul.msk.f32.gmra.mxu0 %vm45_vm0, %v33_v49 }
 0x51f   :  { %964 = vtanh.f32 %v227_v50 }
 0x525   :  { %v965_v51 = vpop.eup %964 }
 0x526   :  { %233 = vrot.lane.b32.xlu2 %v965_v51, %s1047_s15  ;;  %v229_v52 = vmul.f32 0.5, %v965_v51 }
 0x528   :  { %v230_v53 = vadd.f32 0.5, %v229_v52  ;;  %v1237_v52 = vld [vmem:[%s1374_s5 + $0x18] sm:$0xff] }
 0x52a   :  { %v231_v56 = vmul.f32 %v230_v53, %v195_v41 }
 0x580   :  { %v234_v54 = vpop.permute.xlu2 %233 }
 0x581   :  { %v236_v55 = vmul.f32 %v234_v54, %v230_v53  ;;  %v1249_v54 = vld [vmem:[%s1374_s5 + $0x8] sm:$0xff] }
 0x583   :  { %238 = vrot.lane.b32.xlu0 %v236_v55, %s1048_s16  ;;  %v1256_v55 = vld [vmem:[%s1374_s5] sm:$0xff] }
 0x5f5   :  { %v239_v57 = vpop.permute.xlu0 %238 }
 0x5f6   :  { %v241_v58 = vadd.f32 %v239_v57, %v231_v56  ;;  %v105_v57 = vpop.f32.mrf.mxu0 }
 0x5f8   :  { %966 = vtanh.f32 %v241_v58 }
 0x5fe   :  { %v967_v59 = vpop.eup %966 }
 0x5ff   :  { %244 = vrot.lane.b32.xlu1 %v967_v59, %s1047_s15 }
 0x671   :  { %v245_v61 = vpop.permute.xlu1 %244 }
 0x672   :  { %v247_v62 = vmul.f32 %v245_v61, %v230_v53  ;;  %v1242_v53 = vld [vmem:[%s1374_s5 + $0x10] sm:$0xff]  ;;  %v1277_v61 = vld [vmem:[%s1375_s6] ss:$0 sm:$0xff] }
 0x674   :  { %249 = vrot.lane.b32.xlu2 %v247_v62, %s1048_s16 }
 0x6ce   :  { %v250_v63 = vpop.permute.xlu2 %249 }
 0x6cf   :  { %930 = vmatmul.msk.f32.vlgmr.msra.gmra.mxu1 %vm111_vm1, %v250_v63  ;;  %937 = vmatmul.msk.f32.gmra.mxu3 %vm111_vm1, %v250_v63 }
 0x6d0   :  { %548 = vmatpush.msra.mxu1 %v1237_v52 }
 0x6d2   :  { %549 = vmatpush.msra.mxu1 %v1242_v53 }
 0x6d4   :  { %550 = vmatpush.msra.mxu1 %v1249_v54 }
 0x6d6   :  { %551 = vmatpush.msra.mxu1 %v1256_v55 }
 0x74c   :  { %v270_v4 = vpop.f32.mrf.mxu1 }
 0x74d   :  { %v273_v9 = vadd.f32 %v270_v4, %v97_v3 }
 0x74f   :  { %968 = vtanh.f32 %v273_v9 }
 0x755   :  { %v969_v10 = vpop.eup %968 }
 0x756   :  { %279 = vrot.lane.b32.xlu0 %v969_v10, %s1047_s15  ;;  %v275_v11 = vmul.f32 0.5, %v969_v10 }
 0x758   :  { %v276_v12 = vadd.f32 0.5, %v275_v11 }
 0x75a   :  { %v277_v15 = vmul.f32 %v276_v12, %v241_v58  ;;  %v106_v58 = vadd.f32 %v1144_v8, %v105_v57 }
 0x7c8   :  { %v280_v13 = vpop.permute.xlu0 %279 }
 0x7c9   :  { %v282_v14 = vmul.f32 %v280_v13, %v276_v12 }
 0x7cb   :  { %284 = vrot.lane.b32.xlu1 %v282_v14, %s1048_s16 }
 0x83d   :  { %v285_v16 = vpop.permute.xlu1 %284 }
 0x83e   :  { %v287_v17 = vadd.f32 %v285_v16, %v277_v15 }
 0x840   :  { %970 = vtanh.f32 %v287_v17 }
 0x846   :  { %v971_v18 = vpop.eup %970 }
 0x847   :  { %290 = vrot.lane.b32.xlu2 %v971_v18, %s1047_s15 }
 0x8a1   :  { %v291_v19 = vpop.permute.xlu2 %290 }
 0x8a2   :  { %v293_v20 = vmul.f32 %v291_v19, %v276_v12 }
 0x8a4   :  { %295 = vrot.lane.b32.xlu0 %v293_v20, %s1048_s16 }
 0x916   :  { %v296_v22 = vpop.permute.xlu0 %295 }
 0x917   :  { %931 = vmatmul.msk.f32.vlgmr.msrb.gmra.mxu2 %vm111_vm1, %v296_v22  ;;  %938 = vmatmul.msk.f32.gmra.mxu3 %vm111_vm1, %v296_v22 }
 0x918   :  { %449 = vmatpush.msrb.mxu2 %v1093_v0 }
 0x91a   :  { %450 = vmatpush.msrb.mxu2 %v1101_v2 }
 0x91c   :  { %451 = vmatpush.msrb.mxu2 %v1113_v5 }
 0x91e   :  { %452 = vmatpush.msrb.mxu2 %v1121_v6 }
 0x99a   :  { %v316_v25 = vpop.f32.mrf.mxu2 }
 0x99b   :  { %v319_v26 = vadd.f32 %v316_v25, %v100_v24 }
 0x99d   :  { %972 = vtanh.f32 %v319_v26 }
 0x9a3   :  { %v973_v27 = vpop.eup %972 }
 0x9a4   :  { %325 = vrot.lane.b32.xlu1 %v973_v27, %s1047_s15  ;;  %v321_v28 = vmul.f32 0.5, %v973_v27 }
 0x9a6   :  { %v322_v29 = vadd.f32 0.5, %v321_v28 }
 0x9a8   :  { %v323_v0 = vmul.f32 %v322_v29, %v287_v17 }
 0xa16   :  { %v326_v30 = vpop.permute.xlu1 %325 }
 0xa17   :  { %v328_v31 = vmul.f32 %v326_v30, %v322_v29 }
 0xa19   :  { %330 = vrot.lane.b32.xlu2 %v328_v31, %s1048_s16 }
 0xa73   :  { %v331_v2 = vpop.permute.xlu2 %330 }
 0xa74   :  { %v333_v5 = vadd.f32 %v331_v2, %v323_v0 }
 0xa76   :  { %974 = vtanh.f32 %v333_v5 }
 0xa7c   :  { %v975_v6 = vpop.eup %974 }
 0xa7d   :  { %336 = vrot.lane.b32.xlu0 %v975_v6, %s1047_s15 }
 0xaef   :  { %v337_v32 = vpop.permute.xlu0 %336 }
 0xaf0   :  { %v339_v33 = vmul.f32 %v337_v32, %v322_v29  ;;  %v34_v29 = vld [vmem:[%s1369_s0 + $0x38] sm:$0xff]  ;;  %s1049_s0 = smov [#allocation2]  }
 0xaf1   :  { %927 = vmatmul.msk.f32.gmra.mxu0 %vm45_vm0, %v34_v29  ;;  %s909_s21 = sshll.u32 %s1049_s0, 4  ;;  %s910_s21 = int_to_ptr.vmem [resolvable:$true] %s909_s21 }
 0xaf2   :  { %341 = vrot.lane.b32.xlu1 %v339_v33, %s1048_s16 }
 0xb64   :  { %v342_v35 = vpop.permute.xlu1 %341 }
 0xb65   :  { %932 = vmatmul.msk.f32.vlgmr.msra.gmra.mxu2 %vm111_vm1, %v342_v35  ;;  %939 = vmatmul.msk.f32.gmra.mxu3 %vm111_vm1, %v342_v35 }
 0xb66   :  { %594 = vmatpush.msra.mxu2 %v1237_v52 }
 0xb68   :  { %595 = vmatpush.msra.mxu2 %v1242_v53 }
 0xb6a   :  { %596 = vmatpush.msra.mxu2 %v1249_v54 }
 0xb6c   :  { %597 = vmatpush.msra.mxu2 %v1256_v55 }
 0xbe8   :  { %v362_v38 = vpop.f32.mrf.mxu2 }
 0xbe9   :  { %v365_v39 = vadd.f32 %v362_v38, %v103_v37 }
 0xbeb   :  { %976 = vtanh.f32 %v365_v39 }
 0xbf1   :  { %v977_v40 = vpop.eup %976 }
 0xbf2   :  { %371 = vrot.lane.b32.xlu2 %v977_v40, %s1047_s15  ;;  %v367_v41 = vmul.f32 0.5, %v977_v40 }
 0xbf4   :  { %v368_v42 = vadd.f32 0.5, %v367_v41 }
 0xbf6   :  { %v369_v45 = vmul.f32 %v368_v42, %v333_v5 }
 0xc4c   :  { %v372_v43 = vpop.permute.xlu2 %371 }
 0xc4d   :  { %v374_v44 = vmul.f32 %v372_v43, %v368_v42 }
 0xc4f   :  { %376 = vrot.lane.b32.xlu0 %v374_v44, %s1048_s16 }
 0xcc1   :  { %v377_v46 = vpop.permute.xlu0 %376 }
 0xcc2   :  { %v379_v47 = vadd.f32 %v377_v46, %v369_v45 }
 0xcc4   :  { %978 = vtanh.f32 %v379_v47 }
 0xcca   :  { %v979_v48 = vpop.eup %978 }
 0xccb   :  { %382 = vrot.lane.b32.xlu1 %v979_v48, %s1047_s15 }
 0xd3d   :  { %v383_v50 = vpop.permute.xlu1 %382 }
 0xd3e   :  { %v385_v51 = vmul.f32 %v383_v50, %v368_v42 }
 0xd40   :  { %387 = vrot.lane.b32.xlu2 %v385_v51, %s1048_s16 }
 0xd9a   :  { %v388_v56 = vpop.permute.xlu2 %387 }
 0xd9b   :  { %933 = vmatmul.msk.f32.vlgmr.msrb.gmra.mxu1 %vm111_vm1, %v388_v56  ;;  %940 = vmatmul.msk.f32.gmra.mxu3 %vm111_vm1, %v388_v56 }
 0xd9c   :  { %640 = vmatpush.msrb.mxu1 %v1237_v52 }
 0xd9e   :  { %641 = vmatpush.msrb.mxu1 %v1242_v53 }
 0xda0   :  { %642 = vmatpush.msrb.mxu1 %v1249_v54 }
 0xda2   :  { %643 = vmatpush.msrb.mxu1 %v1256_v55 }
 0xda3   :  { %552 = vmatmul.f32.vlgmr.msra.gmra.mxu1 %v1046_v7  ;;  %v512_v7 = vpop.f32.mrf.mxu3 }
 0xda4   :  { %732 = vmatpush.msra.mxu1 %v1237_v52  ;;  %v513_v62 = vadd.f32 %v1277_v61, %v512_v7 }
 0xda6   :  { %733 = vmatpush.msra.mxu1 %v1242_v53 }
 0xda8   :  { %734 = vmatpush.msra.mxu1 %v1249_v54 }
 0xdaa   :  { %735 = vmatpush.msra.mxu1 %v1256_v55 }
 0xdab   :  { %v515_v2 = vpop.f32.mrf.mxu3 }
 0xdac   :  { %v516_v5 = vadd.f32 %v1277_v61, %v515_v2 }
 0xdb3   :  { %v518_v45 = vpop.f32.mrf.mxu3 }
 0xdb4   :  { %v519_v46 = vadd.f32 %v1277_v61, %v518_v45 }
 0xe18   :  { %v408_v59 = vpop.f32.mrf.mxu1 }
 0xe19   :  { %v411_v60 = vadd.f32 %v408_v59, %v106_v58 }
 0xe1b   :  { %980 = vtanh.f32 %v411_v60 }
 0xe20   :  { %v553_v63 = vpop.f32.mrf.mxu1 }
 0xe21   :  { %v981_v1 = vpop.eup %980  ;;  %v556_v3 = vadd.f32 %v553_v63, %v513_v62 }
 0xe22   :  { %417 = vrot.lane.b32.xlu0 %v981_v1, %s1047_s15  ;;  %v413_v9 = vmul.f32 0.5, %v981_v1 }
 0xe23   :  { %982 = vtanh.f32 %v556_v3  ;;  %v521_v3 = vpop.f32.mrf.mxu3 }
 0xe24   :  { %v414_v10 = vadd.f32 0.5, %v413_v9 }
 0xe26   :  { %v415_v17 = vmul.f32 %v414_v10, %v379_v47 }
 0xe29   :  { %v983_v4 = vpop.eup %982 }
 0xe2a   :  { %562 = vrot.lane.b32.xlu1 %v983_v4, %s1047_s15  ;;  %v558_v13 = vmul.f32 0.5, %v983_v4  ;;  %v522_v4 = vadd.f32 %v1277_v61, %v521_v3 }
 0xe2c   :  { %v559_v14 = vadd.f32 0.5, %v558_v13 }
 0xe2e   :  { %v560_v21 = vmul.f32 0.0, %v559_v14 }
 0xe94   :  { %v418_v11 = vpop.permute.xlu0 %417 }
 0xe95   :  { %v420_v12 = vmul.f32 %v418_v11, %v414_v10 }
 0xe97   :  { %422 = vrot.lane.b32.xlu2 %v420_v12, %s1048_s16 }
 0xe9c   :  { %v563_v15 = vpop.permute.xlu1 %562 }
 0xe9d   :  { %v565_v16 = vmul.f32 %v563_v15, %v559_v14 }
 0xe9f   :  { %567 = vrot.lane.b32.xlu0 %v565_v16, %s1048_s16 }
 0xef1   :  { %v423_v18 = vpop.permute.xlu2 %422 }
 0xef2   :  { %v1284_v19 = vadd.f32 %v423_v18, %v415_v17 }
 0xef4   :  { %984 = vtanh.f32 %v1284_v19 }
 0xefa   :  { %v985_v20 = vpop.eup %984 }
 0xefb   :  { %428 = vrot.lane.b32.xlu1 %v985_v20, %s1047_s15  ;;  %v524_v20 = vpop.f32.mrf.mxu3 }
 0xf11   :  { %v568_v22 = vpop.permute.xlu0 %567 }
 0xf12   :  { %v570_v23 = vadd.f32 %v568_v22, %v560_v21  ;;  %v525_v21 = vadd.f32 %v1277_v61, %v524_v20 }
 0xf14   :  { %986 = vtanh.f32 %v570_v23 }
 0xf1a   :  { %v987_v24 = vpop.eup %986 }
 0xf1b   :  { %573 = vrot.lane.b32.xlu2 %v987_v24, %s1047_s15 }
 0xf6d   :  { %v429_v25 = vpop.permute.xlu1 %428 }
 0xf6e   :  { %v431_v26 = vmul.f32 %v429_v25, %v414_v10 }
 0xf70   :  { %433 = vrot.lane.b32.xlu0 %v431_v26, %s1048_s16 }
 0xf75   :  { %v574_v27 = vpop.permute.xlu2 %573 }
 0xf76   :  { %v576_v28 = vmul.f32 %v574_v27, %v559_v14 }
 0xf78   :  { %578 = vrot.lane.b32.xlu1 %v576_v28, %s1048_s16 }
 0xfe2   :  { %v434_v30 = vpop.permute.xlu0 %433 }
 0xfe3   :  { %934 = vmatmul.msk.f32.vlgmr.msrb.gmra.mxu2 %vm111_vm1, %v434_v30  ;;  %941 = vmatmul.msk.f32.gmra.mxu3 %vm111_vm1, %v434_v30 }
 0xfe4   :  { %686 = vmatpush.msrb.mxu2 %v1237_v52 }
 0xfe6   :  { %687 = vmatpush.msrb.mxu2 %v1242_v53 }
 0xfe8   :  { %688 = vmatpush.msrb.mxu2 %v1249_v54 }
 0xfea   :  { %v579_v31 = vpop.permute.xlu1 %578  ;;  %689 = vmatpush.msrb.mxu2 %v1256_v55 }
 0xfeb   :  { %943 = vmatmul.msk.f32.vlgmr.msra.gmra.mxu2 %vm111_vm1, %v579_v31 }
 0xfec   :  { %778 = vmatpush.msra.mxu2 %v1237_v52 }
 0xfee   :  { %779 = vmatpush.msra.mxu2 %v1242_v53 }
 0xff0   :  { %780 = vmatpush.msra.mxu2 %v1249_v54 }
 0xff2   :  { %781 = vmatpush.msra.mxu2 %v1256_v55 }
0x1066   :  { %v1306_v0 = vpop.f32.mrf.mxu2 }
0x106e   :  { %v599_v6 = vpop.f32.mrf.mxu2 }
0x106f   :  { %v602_v32 = vadd.f32 %v599_v6, %v516_v5 }
0x1071   :  { %988 = vtanh.f32 %v602_v32 }
0x1077   :  { %v989_v33 = vpop.eup %988 }
0x1078   :  { %608 = vrot.lane.b32.xlu2 %v989_v33, %s1047_s15  ;;  %v604_v34 = vmul.f32 0.5, %v989_v33  ;;  %v527_v33 = vpop.f32.mrf.mxu3 }
0x107a   :  { %v605_v35 = vadd.f32 0.5, %v604_v34  ;;  %v528_v34 = vadd.f32 %v1277_v61, %v527_v33 }
0x107c   :  { %v606_v38 = vmul.f32 %v605_v35, %v570_v23 }
0x10d2   :  { %v609_v36 = vpop.permute.xlu2 %608 }
0x10d3   :  { %v611_v37 = vmul.f32 %v609_v36, %v605_v35 }
0x10d5   :  { %613 = vrot.lane.b32.xlu0 %v611_v37, %s1048_s16 }
0x1147   :  { %v614_v39 = vpop.permute.xlu0 %613 }
0x1148   :  { %v616_v40 = vadd.f32 %v614_v39, %v606_v38  ;;  %v108_v38 = vpop.f32.mrf.mxu0 }
0x114a   :  { %990 = vtanh.f32 %v616_v40 }
0x1150   :  { %v991_v41 = vpop.eup %990 }
0x1151   :  { %619 = vrot.lane.b32.xlu1 %v991_v41, %s1047_s15 }
0x11c3   :  { %v620_v42 = vpop.permute.xlu1 %619 }
0x11c4   :  { %v622_v43 = vmul.f32 %v620_v42, %v605_v35 }
0x11c6   :  { %624 = vrot.lane.b32.xlu2 %v622_v43, %s1048_s16 }
0x1220   :  { %v625_v44 = vpop.permute.xlu2 %624 }
0x1221   :  { %944 = vmatmul.msk.f32.vlgmr.msrb.gmra.mxu1 %vm111_vm1, %v625_v44 }
0x1222   :  { %824 = vmatpush.msrb.mxu1 %v1237_v52 }
0x1224   :  { %825 = vmatpush.msrb.mxu1 %v1242_v53 }
0x1226   :  { %826 = vmatpush.msrb.mxu1 %v1249_v54 }
0x1228   :  { %827 = vmatpush.msrb.mxu1 %v1256_v55 }
0x129e   :  { %v645_v47 = vpop.f32.mrf.mxu1 }
0x129f   :  { %v648_v48 = vadd.f32 %v645_v47, %v519_v46 }
0x12a1   :  { %992 = vtanh.f32 %v648_v48 }
0x12a7   :  { %v993_v49 = vpop.eup %992 }
0x12a8   :  { %654 = vrot.lane.b32.xlu0 %v993_v49, %s1047_s15  ;;  %v650_v50 = vmul.f32 0.5, %v993_v49 }
0x12aa   :  { %v651_v51 = vadd.f32 0.5, %v650_v50 }
0x12ac   :  { %v652_v58 = vmul.f32 %v651_v51, %v616_v40  ;;  %v109_v40 = vadd.f32 %v1144_v8, %v108_v38 }
0x12ae   :  { %v457_v42 = vadd.f32 %v1306_v0, %v109_v40 }
0x131a   :  { %v655_v56 = vpop.permute.xlu0 %654 }
0x131b   :  { %v657_v57 = vmul.f32 %v655_v56, %v651_v51 }
0x131d   :  { %659 = vrot.lane.b32.xlu1 %v657_v57, %s1048_s16 }
0x138f   :  { %v660_v59 = vpop.permute.xlu1 %659 }
0x1390   :  { %v662_v60 = vadd.f32 %v660_v59, %v652_v58  ;;  %v530_v59 = vpop.f32.mrf.mxu3 }
0x1392   :  { %994 = vtanh.f32 %v662_v60 }
0x1398   :  { %v995_v7 = vpop.eup %994 }
0x1399   :  { %665 = vrot.lane.b32.xlu2 %v995_v7, %s1047_s15 }
0x13f3   :  { %v666_v62 = vpop.permute.xlu2 %665 }
0x13f4   :  { %v668_v63 = vmul.f32 %v666_v62, %v651_v51 }
0x13f6   :  { %670 = vrot.lane.b32.xlu0 %v668_v63, %s1048_s16 }
0x1468   :  { %v671_v1 = vpop.permute.xlu0 %670 }
0x1469   :  { %945 = vmatmul.msk.f32.vlgmr.msrb.gmra.mxu2 %vm111_vm1, %v671_v1 }
0x146a   :  { %870 = vmatpush.msrb.mxu2 %v1237_v52 }
0x146c   :  { %871 = vmatpush.msrb.mxu2 %v1242_v53 }
0x146e   :  { %872 = vmatpush.msrb.mxu2 %v1249_v54 }
0x1470   :  { %873 = vmatpush.msrb.mxu2 %v1256_v55 }
0x14ec   :  { %v691_v9 = vpop.f32.mrf.mxu2 }
0x14ed   :  { %v694_v10 = vadd.f32 %v691_v9, %v522_v4 }
0x14ef   :  { %996 = vtanh.f32 %v694_v10 }
0x14f5   :  { %v997_v11 = vpop.eup %996 }
0x14f6   :  { %700 = vrot.lane.b32.xlu1 %v997_v11, %s1047_s15  ;;  %v696_v12 = vmul.f32 0.5, %v997_v11 }
0x14f8   :  { %v697_v13 = vadd.f32 0.5, %v696_v12 }
0x14fa   :  { %v698_v52 = vmul.f32 %v697_v13, %v662_v60  ;;  %v531_v60 = vadd.f32 %v1277_v61, %v530_v59 }
0x1568   :  { %v701_v14 = vpop.permute.xlu1 %700 }
0x1569   :  { %v703_v15 = vmul.f32 %v701_v14, %v697_v13 }
0x156b   :  { %705 = vrot.lane.b32.xlu2 %v703_v15, %s1048_s16 }
0x15c5   :  { %v706_v53 = vpop.permute.xlu2 %705 }
0x15c6   :  { %v708_v54 = vadd.f32 %v706_v53, %v698_v52 }
0x15c8   :  { %998 = vtanh.f32 %v708_v54 }
0x15ce   :  { %v999_v55 = vpop.eup %998 }
0x15cf   :  { %711 = vrot.lane.b32.xlu0 %v999_v55, %s1047_s15 }
0x1641   :  { %v712_v16 = vpop.permute.xlu0 %711 }
0x1642   :  { %v714_v17 = vmul.f32 %v712_v16, %v697_v13 }
0x1644   :  { %716 = vrot.lane.b32.xlu1 %v714_v17, %s1048_s16 }
0x16b6   :  { %v717_v18 = vpop.permute.xlu1 %716 }
0x16b7   :  { %946 = vmatmul.msk.f32.vlgmr.msra.gmra.mxu1 %vm111_vm1, %v717_v18 }
0x1734   :  { %v737_v22 = vpop.f32.mrf.mxu1 }
0x1735   :  { %v740_v23 = vadd.f32 %v737_v22, %v525_v21 }
0x1737   :  { %1000 = vtanh.f32 %v740_v23 }
0x173d   :  { %v1001_v24 = vpop.eup %1000 }
0x173e   :  { %746 = vrot.lane.b32.xlu2 %v1001_v24, %s1047_s15  ;;  %v742_v25 = vmul.f32 0.5, %v1001_v24 }
0x1740   :  { %v743_v26 = vadd.f32 0.5, %v742_v25 }
0x1742   :  { %v744_v29 = vmul.f32 %v743_v26, %v708_v54 }
0x1798   :  { %v747_v27 = vpop.permute.xlu2 %746 }
0x1799   :  { %v749_v28 = vmul.f32 %v747_v27, %v743_v26 }
0x179b   :  { %751 = vrot.lane.b32.xlu0 %v749_v28, %s1048_s16 }
0x180d   :  { %v752_v30 = vpop.permute.xlu0 %751 }
0x180e   :  { %v754_v31 = vadd.f32 %v752_v30, %v744_v29 }
0x1810   :  { %1002 = vtanh.f32 %v754_v31 }
0x1816   :  { %v1003_v2 = vpop.eup %1002 }
0x1817   :  { %757 = vrot.lane.b32.xlu1 %v1003_v2, %s1047_s15 }
0x1889   :  { %v758_v5 = vpop.permute.xlu1 %757 }
0x188a   :  { %v760_v6 = vmul.f32 %v758_v5, %v743_v26 }
0x188c   :  { %762 = vrot.lane.b32.xlu2 %v760_v6, %s1048_s16 }
0x18e6   :  { %v763_v32 = vpop.permute.xlu2 %762 }
0x18e7   :  { %947 = vmatmul.msk.f32.vlgmr.msra.gmra.mxu2 %vm111_vm1, %v763_v32 }
0x196a   :  { %v783_v35 = vpop.f32.mrf.mxu2 }
0x196b   :  { %v786_v36 = vadd.f32 %v783_v35, %v528_v34 }
0x196d   :  { %1004 = vtanh.f32 %v786_v36 }
0x196e   :  { %1006 = vtanh.f32 %v457_v42 }
0x1973   :  { %v1005_v37 = vpop.eup %1004 }
0x1974   :  { %792 = vrot.lane.b32.xlu0 %v1005_v37, %s1047_s15  ;;  %v788_v39 = vmul.f32 0.5, %v1005_v37  ;;  %v1007_v45 = vpop.eup %1006 }
0x1975   :  { %v459_v51 = vmul.f32 0.5, %v1007_v45 }
0x1976   :  { %v789_v41 = vadd.f32 0.5, %v788_v39 }
0x1977   :  { %v460_v56 = vadd.f32 0.5, %v459_v51 }
0x1978   :  { %v790_v46 = vmul.f32 %v789_v41, %v754_v31 }
0x1979   :  { %v461_v1 = vmul.f32 %v460_v56, %v1284_v19 }
0x19e6   :  { %v793_v43 = vpop.permute.xlu0 %792 }
0x19e7   :  { %v795_v44 = vmul.f32 %v793_v43, %v789_v41 }
0x19e9   :  { %797 = vrot.lane.b32.xlu1 %v795_v44, %s1048_s16 }
0x19f1   :  { %463 = vrot.lane.b32.xlu1 %v1007_v45, %s1047_s15 }
0x1a5b   :  { %v798_v47 = vpop.permute.xlu1 %797 }
0x1a5c   :  { %v800_v48 = vadd.f32 %v798_v47, %v790_v46 }
0x1a5e   :  { %1008 = vtanh.f32 %v800_v48 }
0x1a63   :  { %v464_v0 = vpop.permute.xlu1 %463 }
0x1a64   :  { %v1009_v49 = vpop.eup %1008  ;;  %v466_v57 = vmul.f32 %v464_v0, %v460_v56 }
0x1a65   :  { %803 = vrot.lane.b32.xlu2 %v1009_v49, %s1047_s15 }
0x1abf   :  { %v804_v50 = vpop.permute.xlu2 %803 }
0x1ac0   :  { %v806_v8 = vmul.f32 %v804_v50, %v789_v41 }
0x1ac2   :  { %808 = vrot.lane.b32.xlu0 %v806_v8, %s1048_s16 }
0x1aca   :  { %468 = vrot.lane.b32.xlu0 %v466_v57, %s1048_s16 }
0x1b34   :  { %v809_v58 = vpop.permute.xlu0 %808 }
0x1b35   :  { %948 = vmatmul.msk.f32.vlgmr.msrb.gmra.mxu1 %vm111_vm1, %v809_v58 }
0x1b3c   :  { %v469_v63 = vpop.permute.xlu0 %468 }
0x1b3d   :  { %v471_v3 = vadd.f32 %v469_v63, %v461_v1 }
0x1bb2   :  { %v829_v7 = vpop.f32.mrf.mxu1 }
0x1bb3   :  { %v832_v62 = vadd.f32 %v829_v7, %v531_v60 }
0x1bb5   :  { %1010 = vtanh.f32 %v832_v62 }
0x1bb6   :  { %1012 = vtanh.f32 %v471_v3 }
0x1bbb   :  { %v1011_v4 = vpop.eup %1010 }
0x1bbc   :  { %838 = vrot.lane.b32.xlu2 %v1011_v4, %s1047_s15  ;;  %v1013_v9 = vpop.eup %1012  ;;  %v834_v10 = vmul.f32 0.5, %v1011_v4 }
0x1bbe   :  { %v835_v11 = vadd.f32 0.5, %v834_v10 }
0x1bc0   :  { %v836_v52 = vmul.f32 %v835_v11, %v800_v48 }
0x1bc4   :  { %474 = vrot.lane.b32.xlu2 %v1013_v9, %s1047_s15 }
0x1c16   :  { %v839_v12 = vpop.permute.xlu2 %838 }
0x1c17   :  { %v841_v13 = vmul.f32 %v839_v12, %v835_v11 }
0x1c19   :  { %843 = vrot.lane.b32.xlu1 %v841_v13, %s1048_s16 }
0x1c1e   :  { %v475_v14 = vpop.permute.xlu2 %474 }
0x1c1f   :  { %v477_v15 = vmul.f32 %v475_v14, %v460_v56 }
0x1c21   :  { %491 = vrot.lane.b32.xlu1 %v477_v15, %s1048_s16 }
0x1c8b   :  { %v844_v19 = vpop.permute.xlu1 %843 }
0x1c8c   :  { %v846_v53 = vadd.f32 %v844_v19, %v836_v52 }
0x1c8e   :  { %1014 = vtanh.f32 %v846_v53 }
0x1c93   :  { %v492_v54 = vpop.permute.xlu1 %491 }
0x1c94   :  { %v1015_v55 = vpop.eup %1014  ;;  %942 = vmatmul.msk.f32.gmra.mxu3 %vm111_vm1, %v492_v54 }
0x1c95   :  { %849 = vrot.lane.b32.xlu0 %v1015_v55, %s1047_s15 }
0x1d07   :  { %v850_v16 = vpop.permute.xlu0 %849 }
0x1d08   :  { %v852_v17 = vmul.f32 %v850_v16, %v835_v11 }
0x1d0a   :  { %854 = vrot.lane.b32.xlu2 %v852_v17, %s1048_s16 }
0x1d17   :  { %v533_v20 = vpop.f32.mrf.mxu3 }
0x1d18   :  { %v534_v21 = vadd.f32 %v1277_v61, %v533_v20 }
0x1d64   :  { %v855_v18 = vpop.permute.xlu2 %854 }
0x1d65   :  { %949 = vmatmul.msk.f32.vlgmr.msrb.gmra.mxu2 %vm111_vm1, %v855_v18 }
0x1de8   :  { %v875_v22 = vpop.f32.mrf.mxu2 }
0x1de9   :  { %v878_v23 = vadd.f32 %v875_v22, %v534_v21 }
0x1deb   :  { %1016 = vtanh.f32 %v878_v23 }
0x1df1   :  { %v1017_v24 = vpop.eup %1016 }
0x1df2   :  { %884 = vrot.lane.b32.xlu0 %v1017_v24, %s1047_s15  ;;  %v880_v25 = vmul.f32 0.5, %v1017_v24 }
0x1df4   :  { %v881_v26 = vadd.f32 0.5, %v880_v25 }
0x1df6   :  { %v882_v29 = vmul.f32 %v881_v26, %v846_v53 }
0x1e64   :  { %v885_v27 = vpop.permute.xlu0 %884 }
0x1e65   :  { %v887_v28 = vmul.f32 %v885_v27, %v881_v26 }
0x1e67   :  { %889 = vrot.lane.b32.xlu1 %v887_v28, %s1048_s16 }
0x1ed9   :  { %v890_v30 = vpop.permute.xlu1 %889 }
0x1eda   :  { %v892_v31 = vadd.f32 %v890_v30, %v882_v29 }
0x1edc   :  { %1018 = vtanh.f32 %v892_v31 }
0x1ee2   :  { %v1019_v2 = vpop.eup %1018 }
0x1ee3   :  { %895 = vrot.lane.b32.xlu2 %v1019_v2, %s1047_s15 }
0x1f3d   :  { %v896_v61 = vpop.permute.xlu2 %895 }
0x1f3e   :  { %v898_v5 = vmul.f32 %v896_v61, %v881_v26 }
0x1f40   :  { %900 = vrot.lane.b32.xlu0 %v898_v5, %s1048_s16 }
0x1fb2   :  { %v901_v6 = vpop.permute.xlu0 %900 }
0x1fb3   :  { %903 = vst.msk [vmem:[#allocation2] sm:$0xff] %vm111_vm1, %v901_v6 }
0x1fb4   :  { %914 = dma.vmem_to_hbm [thread:$0]  %s910_s21, 128, %s912_s24, [#allocation3]  }
0x1fb5   :  { %1044 = dma.done.wait [#allocation3], 128  }
0x1fb6   :  { %1045 = vsyncadd [#allocation3], 4294967168 }
0x1fb7   :  { %919 = vsyncpa [#allocation3], 1 }

</bundles_post_ra>
